<compile_context>
chip_gen: v7x
topology: tpu7x:2x2x1
jax: 0.10.0
libtpu: 0.0.40
codegen_flags: <defaults>
</compile_context>

<pallas_src>
import functools

import jax
import jax.numpy as jnp
from jax.experimental import pallas as pl
from jax.experimental.pallas import tpu as pltpu

NUM_FEATURES = 128              # synthetic backbone width (resnet18 would be 512)
PROJ_HIDDEN = 256               # nn.Linear(num_features, 256)
PROJ_SIZE = 128                 # projection_size
FC_HIDDEN = NUM_FEATURES // 8   # num_features // 8
NBR_OUTPUTS = 1                 # nbr_outputs

HID_CAT = PROJ_HIDDEN + 2 * FC_HIDDEN          # 288: fused first-layer width
OUT_CAT = PROJ_SIZE + 2 * NBR_OUTPUTS          # 130: live columns [proj|pred|unc]
OUT_PAD = 256                                  # lane-dense padded output width

TB = 8                                         # batch tile (sublane-aligned)


def _fixmatch_kernel(patch_ref, cw_ref, cb_ref, w1_ref, b1_ref, w2_ref, b2_ref,
                     out_ref, pool_ref, *, tb, thw):
    """Grid step = (batch-tile b, HW-chunk s). bf16 matmuls, f32 accumulate."""
    s = pl.program_id(1)

    @pl.when(s == 0)
    def _init():
        pool_ref[...] = jnp.zeros_like(pool_ref)

    # ---- backbone chunk: conv3x3 (im2col matmul, bf16) + f32 bias/ReLU ----
    k = patch_ref.shape[-1]
    p = patch_ref[...].reshape(tb * thw, k)                    # [tb*thw, K] bf16
    conv = jnp.dot(p, cw_ref[...],
                   preferred_element_type=jnp.float32)         # [tb*thw, F] f32
    conv = jnp.maximum(conv + cb_ref[...], 0.0)
    # Partial global-average pool (1/(H*W) scale is folded into w1): plain
    # per-sample sublane sum accumulated into the f32 scratch.
    pool_ref[...] += jnp.sum(conv.reshape(tb, thw, NUM_FEATURES), axis=1)

    @pl.when(s == pl.num_programs(1) - 1)
    def _heads():
        # ---- fused head layer 1: [tb,F] @ [F,288] -> ReLU (f32) ----
        h1 = jnp.dot(pool_ref[...].astype(jnp.bfloat16), w1_ref[...],
                     preferred_element_type=jnp.float32) + b1_ref[...]
        h1 = jnp.maximum(h1, 0.0)                               # [tb, 288]
        # ---- fused head layer 2: [tb,288] @ [288,256] (block-structured,
        # columns 130..255 are zero padding) -> single lane-dense store ----
        out = jnp.dot(h1.astype(jnp.bfloat16), w2_ref[...],
                      preferred_element_type=jnp.float32) + b2_ref[...]
        out_ref[...] = out


def init_params(key, in_channels):
    """Deterministic synthetic parameters (no checkpoint load)."""
    ks = jax.random.split(key, 16)
    k = 9 * in_channels
    scale = lambda fan_in: 1.0 / jnp.sqrt(jnp.float32(fan_in))

    def lin(kw, kb, fan_in, fan_out):
        w = jax.random.normal(kw, (fan_in, fan_out), jnp.float32) * scale(fan_in)
        b = jax.random.normal(kb, (1, fan_out), jnp.float32) * 0.01
        return w, b

    p = {}
    p['conv_w'], p['conv_b'] = lin(ks[0], ks[1], k, NUM_FEATURES)
    p['wp1'], p['bp1'] = lin(ks[2], ks[3], NUM_FEATURES, PROJ_HIDDEN)
    p['wp2'], p['bp2'] = lin(ks[4], ks[5], PROJ_HIDDEN, PROJ_SIZE)
    p['wf1'], p['bf1'] = lin(ks[6], ks[7], NUM_FEATURES, FC_HIDDEN)
    p['wf2'], p['bf2'] = lin(ks[8], ks[9], FC_HIDDEN, NBR_OUTPUTS)
    p['wu1'], p['bu1'] = lin(ks[10], ks[11], NUM_FEATURES, FC_HIDDEN)
    p['wu2'], p['bu2'] = lin(ks[12], ks[13], FC_HIDDEN, NBR_OUTPUTS)
    return p


def _pack_params(params, hw):
    """Fuse the three heads into two packed matrices (exact up to fp order)."""
    inv_hw = jnp.float32(1.0 / hw)
    # First layers: concat along out dim; fold the mean-pool 1/(H*W) scale in.
    w1 = jnp.concatenate([params['wp1'], params['wf1'], params['wu1']],
                         axis=1) * inv_hw                       # [F, 288]
    b1 = jnp.concatenate([params['bp1'], params['bf1'], params['bu1']],
                         axis=1)                                # [1, 288]
    # Second layers: block-structured + zero-padded to 256 lanes (unmasked
    # stores); zeros elsewhere keep the result exact.
    w2 = jnp.zeros((HID_CAT, OUT_PAD), jnp.float32)
    w2 = w2.at[:PROJ_HIDDEN, :PROJ_SIZE].set(params['wp2'])
    w2 = w2.at[PROJ_HIDDEN:PROJ_HIDDEN + FC_HIDDEN,
               PROJ_SIZE:PROJ_SIZE + NBR_OUTPUTS].set(params['wf2'])
    w2 = w2.at[PROJ_HIDDEN + FC_HIDDEN:HID_CAT,
               PROJ_SIZE + NBR_OUTPUTS:PROJ_SIZE + 2 * NBR_OUTPUTS].set(params['wu2'])
    b2 = jnp.zeros((1, OUT_PAD), jnp.float32)
    b2 = b2.at[:, :PROJ_SIZE].set(params['bp2'])
    b2 = b2.at[:, PROJ_SIZE:PROJ_SIZE + NBR_OUTPUTS].set(params['bf2'])
    b2 = b2.at[:, PROJ_SIZE + NBR_OUTPUTS:PROJ_SIZE + 2 * NBR_OUTPUTS].set(params['bu2'])
    return (params['conv_w'].astype(jnp.bfloat16),
            params['conv_b'].astype(jnp.float32),
            w1.astype(jnp.bfloat16), b1.astype(jnp.float32),
            w2.astype(jnp.bfloat16), b2.astype(jnp.float32))


def _pick_thw(hw, tb, budget_bytes=8 * 1024 * 1024):
    """Largest HW-chunk (multiple of 8, dividing HW) whose double-buffered,
    lane-padded bf16 patch block fits the budget; full HW if already small."""
    def block_bytes(c):
        return tb * c * 128 * 2 * 2     # lanes padded to 128, bf16, 2 buffers
    if block_bytes(hw) <= budget_bytes or hw % 8 != 0:
        return hw
    best = hw
    for cand in range(hw, 7, -8):
        if hw % cand == 0:
            best = cand
            if block_bytes(cand) <= budget_bytes:
                return cand
    return best


def _vmem_limit_bytes(tb, thw, k):
    """Scoped-VMEM budget derived from the actual block sizes (with headroom)."""
    lane = lambda n: -(-n // 128) * 128
    def padded(rows, cols, itemsize, sub):
        return -(-rows // sub) * sub * lane(cols) * itemsize
    patch = tb * thw * lane(k) * 2 * 2                       # bf16, double-buffered
    out_b = tb * lane(OUT_PAD) * 4 * 2
    consts = 2 * (padded(k, NUM_FEATURES, 2, 16) + padded(1, NUM_FEATURES, 4, 8)
                  + padded(NUM_FEATURES, HID_CAT, 2, 16) + padded(1, HID_CAT, 4, 8)
                  + padded(HID_CAT, OUT_PAD, 2, 16) + padded(1, OUT_PAD, 4, 8))
    scratch = tb * lane(NUM_FEATURES) * 4
    temps = 2 * tb * thw * lane(NUM_FEATURES) * 4            # f32 conv/ReLU temps
    est = patch + out_b + consts + scratch + temps
    return int(min(max(2 * est, 16 * 1024 * 1024), 64 * 1024 * 1024))


@jax.jit
def fixmatch_forward(x_nchw, params):
    """Returns (prediction[B], projection[B, PROJ_SIZE], uncertainty[B])."""
    B, Cin, H, W = x_nchw.shape
    HW = H * W
    K = 9 * Cin

    # Pad the batch to a multiple of TB=8: keeps the output block sublane
    # aligned and the head matmuls at M>=8 for any batch size.
    B_pad = ((B + TB - 1) // TB) * TB
    if B_pad != B:
        x_nchw = jnp.pad(x_nchw, ((0, B_pad - B), (0, 0), (0, 0), (0, 0)))

    THW = _pick_thw(HW, TB)
    ns = HW // THW

    # NCHW -> NHWC (bf16), pad, im2col (glue; compute happens in the kernel).
    x = jnp.transpose(x_nchw, (0, 2, 3, 1)).astype(jnp.bfloat16)
    xp = jnp.pad(x, ((0, 0), (1, 1), (1, 1), (0, 0)))
    patches = jnp.concatenate(
        [xp[:, dy:dy + H, dx:dx + W, :] for dy in range(3) for dx in range(3)],
        axis=-1).reshape(B_pad, HW, K)                       # [Bp, HW, K] bf16

    cw, cb, w1, b1, w2, b2 = _pack_params(params, HW)

    def _const(arr):
        # Whole-parameter block, same block for every grid step (no re-DMA).
        zeros = (0,) * arr.ndim
        return pl.BlockSpec(arr.shape, lambda b, s, _z=zeros: _z)

    in_specs = [
        pl.BlockSpec((TB, THW, K), lambda b, s: (b, s, 0)),
        _const(cw), _const(cb), _const(w1), _const(b1), _const(w2), _const(b2),
    ]
    out_specs = pl.BlockSpec((TB, OUT_PAD), lambda b, s: (b, 0))
    out_shape = jax.ShapeDtypeStruct((B_pad, OUT_PAD), jnp.float32)

    out = pl.pallas_call(
        functools.partial(_fixmatch_kernel, tb=TB, thw=THW),
        out_shape=out_shape,
        grid=(B_pad // TB, ns),
        in_specs=in_specs,
        out_specs=out_specs,
        scratch_shapes=[pltpu.VMEM((TB, NUM_FEATURES), jnp.float32)],
        compiler_params=pltpu.CompilerParams(
            dimension_semantics=("parallel", "arbitrary"),
            vmem_limit_bytes=_vmem_limit_bytes(TB, THW, K)),
    )(patches, cw, cb, w1, b1, w2, b2)

    projection = out[:B, :PROJ_SIZE]
    prediction = out[:B, PROJ_SIZE:PROJ_SIZE + NBR_OUTPUTS].reshape(-1)
    uncertainty = out[:B,
                      PROJ_SIZE + NBR_OUTPUTS:PROJ_SIZE + 2 * NBR_OUTPUTS].reshape(-1)
    return prediction, projection, uncertainty


if __name__ == "__main__":
    key = jax.random.PRNGKey(0)
    k_x, k_p = jax.random.split(key)

    B, Cin, H, W = 16, 3, 16, 16
    x = jax.random.normal(k_x, (B, Cin, H, W), jnp.float32)   # NCHW like PyTorch
    params = init_params(k_p, Cin)

    prediction, projection, uncertainty = fixmatch_forward(x, params)
    jax.block_until_ready((prediction, projection, uncertainty))

    assert prediction.shape == (B * NBR_OUTPUTS,)
    assert projection.shape == (B, PROJ_SIZE)
    assert uncertainty.shape == (B * NBR_OUTPUTS,)
    assert bool(jnp.all(jnp.isfinite(prediction)))
    assert bool(jnp.all(jnp.isfinite(projection)))
    assert bool(jnp.all(jnp.isfinite(uncertainty)))
    print("KERNEL_OK")
</pallas_src>

<mosaic_0001>
module attributes {stable_mosaic.version = 11 : i64} {
  func.func @_fixmatch_kernel(%arg0: i32, %arg1: i32, %arg2: memref<8x256x27xbf16, #tpu.memory_space<vmem>>, %arg3: memref<27x128xbf16, #tpu.memory_space<vmem>>, %arg4: memref<1x128xf32, #tpu.memory_space<vmem>>, %arg5: memref<128x288xbf16, #tpu.memory_space<vmem>>, %arg6: memref<1x288xf32, #tpu.memory_space<vmem>>, %arg7: memref<288x256xbf16, #tpu.memory_space<vmem>>, %arg8: memref<1x256xf32, #tpu.memory_space<vmem>>, %arg9: memref<8x256xf32, #tpu.memory_space<vmem>>, %arg10: memref<8x128xf32, #tpu.memory_space<vmem>>) attributes {dimension_semantics = [#tpu.dimension_semantics<parallel>, #tpu.dimension_semantics<arbitrary>], iteration_bounds = array<i64: 2, 1>, scalar_prefetch = 0 : i64, scratch_operands = 1 : i64, tpu.core_type = #tpu.core_type<tc>, window_params = [{transform_indices = @transform_0, window_bounds = array<i64: 8, 256, 27>}, {pipeline_mode = #tpu.pipeline_mode<synchronous>, transform_indices = @transform_1, window_bounds = array<i64: 27, 128>}, {pipeline_mode = #tpu.pipeline_mode<synchronous>, transform_indices = @transform_2, window_bounds = array<i64: 1, 128>}, {pipeline_mode = #tpu.pipeline_mode<synchronous>, transform_indices = @transform_3, window_bounds = array<i64: 128, 288>}, {pipeline_mode = #tpu.pipeline_mode<synchronous>, transform_indices = @transform_4, window_bounds = array<i64: 1, 288>}, {pipeline_mode = #tpu.pipeline_mode<synchronous>, transform_indices = @transform_5, window_bounds = array<i64: 288, 256>}, {pipeline_mode = #tpu.pipeline_mode<synchronous>, transform_indices = @transform_6, window_bounds = array<i64: 1, 256>}, {transform_indices = @transform_7, window_bounds = array<i64: 8, 256>}]} {
    %c0_i32 = arith.constant 0 : i32
    %0 = arith.cmpi eq, %arg1, %c0_i32 : i32
    %1 = arith.extui %0 : i1 to i32
    %c0_i32_0 = arith.constant 0 : i32
    %2 = arith.cmpi ne, %1, %c0_i32_0 : i32
    scf.if %2 {
      %cst_15 = arith.constant 0.000000e+00 : f32
      %20 = vector.broadcast %cst_15 : f32 to vector<8x128xf32>
      %c0_16 = arith.constant 0 : index
      %c0_17 = arith.constant 0 : index
      %21 = vector.load %arg10[%c0_16, %c0_17] : memref<8x128xf32, #tpu.memory_space<vmem>>, vector<8x128xf32>
      tpu.vector_store %arg10[%c0_16, %c0_17], %20 {strides = array<i32>} : memref<8x128xf32, #tpu.memory_space<vmem>>, vector<8x128xf32>,
    } else {
    }
    %c0 = arith.constant 0 : index
    %c0_1 = arith.constant 0 : index
    %c0_2 = arith.constant 0 : index
    %3 = vector.load %arg2[%c0, %c0_1, %c0_2] : memref<8x256x27xbf16, #tpu.memory_space<vmem>>, vector<8x256x27xbf16>
    %4 = vector.shape_cast %3 : vector<8x256x27xbf16> to vector<2048x27xbf16>
    %c0_3 = arith.constant 0 : index
    %c0_4 = arith.constant 0 : index
    %5 = vector.load %arg3[%c0_3, %c0_4] : memref<27x128xbf16, #tpu.memory_space<vmem>>, vector<27x128xbf16>
    %cst = arith.constant dense<0.000000e+00> : vector<2048x128xf32>
    %6 = tpu.matmul %4, %5, %cst {dimension_numbers = #tpu.dot_dimension_numbers<[1], [0], [0], [1], [0, 0, 1, 1], [], []>} : vector<2048x27xbf16>, vector<27x128xbf16>, vector<2048x128xf32> -> vector<2048x128xf32>
    %c0_5 = arith.constant 0 : index
    %c0_6 = arith.constant 0 : index
    %7 = vector.load %arg4[%c0_5, %c0_6] : memref<1x128xf32, #tpu.memory_space<vmem>>, vector<1x128xf32>
    %8 = vector.broadcast %7 : vector<1x128xf32> to vector<2048x128xf32>
    %9 = arith.addf %6, %8 : vector<2048x128xf32>
    %cst_7 = arith.constant 0.000000e+00 : f32
    %10 = vector.broadcast %cst_7 : f32 to vector<2048x128xf32>
    %11 = arith.maximumf %9, %10 : vector<2048x128xf32>
    %c0_8 = arith.constant 0 : index
    %c0_9 = arith.constant 0 : index
    %12 = vector.load %arg10[%c0_8, %c0_9] : memref<8x128xf32, #tpu.memory_space<vmem>>, vector<8x128xf32>
    %13 = vector.shape_cast %11 : vector<2048x128xf32> to vector<8x256x128xf32>
    %cst_10 = arith.constant dense<0.000000e+00> : vector<8x128xf32>
    %14 = vector.multi_reduction <add>, %13, %cst_10 [1] : vector<8x256x128xf32> to vector<8x128xf32>
    %15 = arith.addf %12, %14 : vector<8x128xf32>
    %c0_11 = arith.constant 0 : index
    %c0_12 = arith.constant 0 : index
    %16 = vector.load %arg10[%c0_11, %c0_12] : memref<8x128xf32, #tpu.memory_space<vmem>>, vector<8x128xf32>
    tpu.vector_store %arg10[%c0_11, %c0_12], %15 {strides = array<i32>} : memref<8x128xf32, #tpu.memory_space<vmem>>, vector<8x128xf32>,
    %c0_i32_13 = arith.constant 0 : i32
    %17 = arith.cmpi eq, %arg1, %c0_i32_13 : i32
    %18 = arith.extui %17 : i1 to i32
    %c0_i32_14 = arith.constant 0 : i32
    %19 = arith.cmpi ne, %18, %c0_i32_14 : i32
    scf.if %19 {
      %c0_15 = arith.constant 0 : index
      %c0_16 = arith.constant 0 : index
      %20 = vector.load %arg10[%c0_15, %c0_16] : memref<8x128xf32, #tpu.memory_space<vmem>>, vector<8x128xf32>
      %21 = arith.truncf %20 : vector<8x128xf32> to vector<8x128xbf16>
      %c0_17 = arith.constant 0 : index
      %c0_18 = arith.constant 0 : index
      %22 = vector.load %arg5[%c0_17, %c0_18] : memref<128x288xbf16, #tpu.memory_space<vmem>>, vector<128x288xbf16>
      %cst_19 = arith.constant dense<0.000000e+00> : vector<8x288xf32>
      %23 = tpu.matmul %21, %22, %cst_19 {dimension_numbers = #tpu.dot_dimension_numbers<[1], [0], [0], [1], [0, 0, 1, 1], [], []>} : vector<8x128xbf16>, vector<128x288xbf16>, vector<8x288xf32> -> vector<8x288xf32>
      %c0_20 = arith.constant 0 : index
      %c0_21 = arith.constant 0 : index
      %24 = vector.load %arg6[%c0_20, %c0_21] : memref<1x288xf32, #tpu.memory_space<vmem>>, vector<1x288xf32>
      %25 = vector.broadcast %24 : vector<1x288xf32> to vector<8x288xf32>
      %26 = arith.addf %23, %25 : vector<8x288xf32>
      %cst_22 = arith.constant 0.000000e+00 : f32
      %27 = vector.broadcast %cst_22 : f32 to vector<8x288xf32>
      %28 = arith.maximumf %26, %27 : vector<8x288xf32>
      %29 = arith.truncf %28 : vector<8x288xf32> to vector<8x288xbf16>
      %c0_23 = arith.constant 0 : index
      %c0_24 = arith.constant 0 : index
      %30 = vector.load %arg7[%c0_23, %c0_24] : memref<288x256xbf16, #tpu.memory_space<vmem>>, vector<288x256xbf16>
      %cst_25 = arith.constant dense<0.000000e+00> : vector<8x256xf32>
      %31 = tpu.matmul %29, %30, %cst_25 {dimension_numbers = #tpu.dot_dimension_numbers<[1], [0], [0], [1], [0, 0, 1, 1], [], []>} : vector<8x288xbf16>, vector<288x256xbf16>, vector<8x256xf32> -> vector<8x256xf32>
      %c0_26 = arith.constant 0 : index
      %c0_27 = arith.constant 0 : index
      %32 = vector.load %arg8[%c0_26, %c0_27] : memref<1x256xf32, #tpu.memory_space<vmem>>, vector<1x256xf32>
      %33 = vector.broadcast %32 : vector<1x256xf32> to vector<8x256xf32>
      %34 = arith.addf %31, %33 : vector<8x256xf32>
      %c0_28 = arith.constant 0 : index
      %c0_29 = arith.constant 0 : index
      %35 = vector.load %arg9[%c0_28, %c0_29] : memref<8x256xf32, #tpu.memory_space<vmem>>, vector<8x256xf32>
      tpu.vector_store %arg9[%c0_28, %c0_29], %34 {strides = array<i32>} : memref<8x256xf32, #tpu.memory_space<vmem>>, vector<8x256xf32>,
    } else {
    }
    return
  }
  func.func @transform_0(%arg0: i32, %arg1: i32) -> (i32, i32, i32) {
    %c0_i32 = arith.constant 0 : i32
    %c0_i32_0 = arith.constant 0 : i32
    return %arg0, %arg1, %c0_i32 : i32, i32, i32
  }
  func.func @transform_1(%arg0: i32, %arg1: i32) -> (i32, i32) {
    %c0_i32 = arith.constant 0 : i32
    %c0_i32_0 = arith.constant 0 : i32
    %c0_i32_1 = arith.constant 0 : i32
    return %c0_i32, %c0_i32_0 : i32, i32
  }
  func.func @transform_2(%arg0: i32, %arg1: i32) -> (i32, i32) {
    %c0_i32 = arith.constant 0 : i32
    %c0_i32_0 = arith.constant 0 : i32
    %c0_i32_1 = arith.constant 0 : i32
    return %c0_i32, %c0_i32_0 : i32, i32
  }
  func.func @transform_3(%arg0: i32, %arg1: i32) -> (i32, i32) {
    %c0_i32 = arith.constant 0 : i32
    %c0_i32_0 = arith.constant 0 : i32
    %c0_i32_1 = arith.constant 0 : i32
    return %c0_i32, %c0_i32_0 : i32, i32
  }
  func.func @transform_4(%arg0: i32, %arg1: i32) -> (i32, i32) {
    %c0_i32 = arith.constant 0 : i32
    %c0_i32_0 = arith.constant 0 : i32
    %c0_i32_1 = arith.constant 0 : i32
    return %c0_i32, %c0_i32_0 : i32, i32
  }
  func.func @transform_5(%arg0: i32, %arg1: i32) -> (i32, i32) {
    %c0_i32 = arith.constant 0 : i32
    %c0_i32_0 = arith.constant 0 : i32
    %c0_i32_1 = arith.constant 0 : i32
    return %c0_i32, %c0_i32_0 : i32, i32
  }
  func.func @transform_6(%arg0: i32, %arg1: i32) -> (i32, i32) {
    %c0_i32 = arith.constant 0 : i32
    %c0_i32_0 = arith.constant 0 : i32
    %c0_i32_1 = arith.constant 0 : i32
    return %c0_i32, %c0_i32_0 : i32, i32
  }
  func.func @transform_7(%arg0: i32, %arg1: i32) -> (i32, i32) {
    %c0_i32 = arith.constant 0 : i32
    %c0_i32_0 = arith.constant 0 : i32
    return %arg0, %c0_i32 : i32, i32
  }
}

</mosaic_0001>

<bundles_post_ra>
// kernel: fixmatch_forward.1
= control target key start
LH: loop header
LB: loop body
LE: loop exit
PB: predicated region body
PF: predicated region fallthrough
CT: control target
= control target key end

     0   :  { %s4994_s24 = smov 0   ;;  %s4996_s25 = smov 0   ;;  %s5803_s0 = inlined_call_operand.vmem [shape: bf16[16,256,27], index: 0, kind: input, shape index: {}]   ;;  %s5804_s1 = inlined_call_operand.vmem [shape: bf16[27,128], index: 1, kind: input, shape index: {}]   ;;  %s5805_s2 = inlined_call_operand.vmem [shape: f32[1,128], index: 2, kind: input, shape index: {}]   ;;  %s5806_s3 = inlined_call_operand.vmem [shape: bf16[128,288], index: 3, kind: input, shape index: {}]   ;;  %s5807_s4 = inlined_call_operand.vmem [shape: f32[1,288], index: 4, kind: input, shape index: {}]   ;;  %s5808_s5 = inlined_call_operand.vmem [shape: bf16[288,256], index: 5, kind: input, shape index: {}]   ;;  %s5809_s6 = inlined_call_operand.vmem [shape: f32[1,256], index: 6, kind: input, shape index: {}]   ;;  %s5810_s7 = inlined_call_operand.vmem [shape: f32[16,256], index: 7, kind: output, shape index: {}]  }
   0x1   :  { %s4998_s26 = smov 0  }
   0x2 LB: > { %s29_s27 = sadd.s32 1, %s4944_s25  ;;  %p3921_p0 = scmp.ge.s32.totalorder %s4948_s26, 1  ;;  %s4948_s26 = sphi %s4998_s26, %s17_s26   ;;  %s4944_s25 = sphi %s4996_s25, %s5812_s25   ;;  %s4940_s24 = sphi %s4994_s24, %s5811_s24  }
   0x3   : > { %p31_p1 = scmp.ge.s32.totalorder %s29_s27, 2  ;;  %p258_p2 = scmp.lt.s32.totalorder %s4948_s26, 3 }
   0x5   : > { %s5814_s27 = smov (%p31_p1, %s29_s27), 0  ;;  %p259_p3 = pnand %p3921_p0, %p258_p2 }
   0x6   : > { %v4708_v0 = vld [vmem:[%s5804_s1] sm:$0xff] (!%p259_p3)   ;;  %vm1621_vm0 = vcmask (!%p259_p3), 1044480   ;;  %v4709_v1 = vld [vmem:[%s5804_s1 + $0x8] sm:$0x3f] (!%p259_p3)   ;;  %vm1622_vm1 = vcmask (!%p259_p3), 1045504   ;;  %s3922_s9 = sshll.u32 (!%p259_p3), %s4940_s24, 3 }
   0x7   : > { %262 = sbr.rel (%p259_p3) target bundleno = 1040 (0x410), region = 48  ;;  %4390 = vmatprep.subr.bf16.mxu0 (!%p259_p3), %v4708_v0  ;;  %4670 = vmatprep.subr.bf16.mxu1 (!%p259_p3), %v4708_v0  ;;  %v4950_v2 = vmov (!%p259_p3), 65535   ;;  %p297_p4 = scmp.lt.s32.totalorder (!%p259_p3), %s3922_s9, 15  ;;  %vm1236_vm2 = vcmask (!%p259_p3), 220160   ;;  %vm3246_vm3 = vcmask (!%p259_p3), 1041409   ;;  %vm3248_vm4 = vcmask (!%p259_p3), 1042434  }
   0x8   : > { %4391 = vmatpush3.bf16.msra.mxu0 (!%p259_p3), %v4708_v0  ;;  %v1623_v3 = vsel (!%p259_p3), %vm1621_vm0, 4294967295, %v4950_v2  ;;  %4672 = vmatpush3.bf16.msra.mxu1 (!%p259_p3), %v4708_v0  ;;  %vm3250_vm5 = vcmask (!%p259_p3), 1043459   ;;  %vm3252_vm6 = vcmask (!%p259_p3), 1044484   ;;  %vm3254_vm7 = vcmask (!%p259_p3), 1045509   ;;  %p307_p5 = scmp.lt.s32.totalorder (!%p259_p3), %s4940_s24, 1 }
   0x9   : > { %v1624_v4 = vsel (!%p259_p3), %vm1622_vm1, %v1623_v3, 0  ;;  %vm3256_vm8 = vcmask (!%p259_p3), 1046534   ;;  %vm3258_vm9 = vcmask (!%p259_p3), 1047559   ;;  %vm4953_vm10 = vmmov (!%p259_p3), 0  }
   0xa   : > { %v1626_v5 = vand.u32 (!%p259_p3), %v4709_v1, %v1624_v4  ;;  %vm3760_vm11 = vcmask (!%p259_p3), 261120  }
   0xc   : > { %4392 = vmatprep.subr.bf16.mxu0 (!%p259_p3), %v1626_v5  ;;  %4671 = vmatprep.subr.bf16.mxu1 (!%p259_p3), %v1626_v5 }
   0xd   : > { %4393 = vmatpush3.bf16.msra.mxu0 (!%p259_p3), %v1626_v5  ;;  %4673 = vmatpush3.bf16.msra.mxu1 (!%p259_p3), %v1626_v5 }
   0xe   : > { %s5816_s9 = smov (!%p297_p4, %s3922_s9), 15  ;;  %s5818_s24 = smov (!%p307_p5, %s4940_s24), 1 }
   0xf   : > { %s4249_s10 = sshll.u32 %s5816_s9, 7  ;;  %s4250_s11 = sshll.u32 %s5818_s24, 4 }
  0x10   : > { %s5024_s13 = scalar_lea.vmem %s5803_s0, %s4249_s10  ;;  %s311_s14 = scalar_lea.vmem %s5810_s7, %s4250_s11 }
  0x11   : > { %v4710_v6 = vld [vmem:[%s5024_s13] sm:$0xff]   ;;  %v4711_v7 = vld [vmem:[%s5024_s13 + $0x8] sm:$0xff]   ;;  %v4712_v8 = vld [vmem:[%s5024_s13 + $0x10] sm:$0xff]  }
  0x12   : > { %4394 = vmatprep.mubr.msk.bf16.mxu0 %vm1236_vm2, %v4710_v6  ;;  %v4713_v9 = vld [vmem:[%s5024_s13 + $0x18] sm:$0xff]   ;;  %v4714_v10 = vld [vmem:[%s5024_s13 + $0x20] sm:$0xff]   ;;  %v4715_v11 = vld [vmem:[%s5024_s13 + $0x28] sm:$0xff]  }
  0x13   : > { %4395 = vmatmul.mubr.msk.bf16.vlgmr.msra.gmra.mrb[0].mxu0 %vm1236_vm2, %v4711_v7  ;;  %v4716_v12 = vld [vmem:[%s5024_s13 + $0x30] sm:$0xff]   ;;  %v4717_v13 = vld [vmem:[%s5024_s13 + $0x38] sm:$0xff]   ;;  %v4718_v14 = vld [vmem:[%s5024_s13 + $0x40] sm:$0xff]  }
  0x14   : > { %4398 = vmatprep.mubr.msk.bf16.mxu0 %vm1236_vm2, %v4712_v8  ;;  %v4738_v15 = vld [vmem:[%s5024_s13 + $0x270] sm:$0xff]   ;;  %v4739_v16 = vld [vmem:[%s5024_s13 + $0x278] sm:$0xff]   ;;  %v4719_v17 = vld [vmem:[%s5024_s13 + $0x48] sm:$0xff]  }
  0x15   : > { %4550 = vmatprep.mubr.msk.bf16.mxu1 %vm1236_vm2, %v4738_v15  ;;  %v4720_v18 = vld [vmem:[%s5024_s13 + $0x50] sm:$0xff]   ;;  %v4742_v19 = vld [vmem:[%s5024_s13 + $0x280] sm:$0xff]   ;;  %v4743_v20 = vld [vmem:[%s5024_s13 + $0x288] sm:$0xff]  }
  0x16   : > { %4551 = vmatmul.mubr.msk.bf16.vlgmr.msra.gmra.mrb[0].mxu1 %vm1236_vm2, %v4739_v16  ;;  %v4746_v21 = vld [vmem:[%s5024_s13 + $0x290] sm:$0xff]   ;;  %v4721_v22 = vld [vmem:[%s5024_s13 + $0x58] sm:$0xff]   ;;  %v4722_v23 = vld [vmem:[%s5024_s13 + $0x60] sm:$0xff]  }
  0x17   : > { %4554 = vmatprep.mubr.msk.bf16.mxu1 %vm1236_vm2, %v4742_v19  ;;  %v4747_v24 = vld [vmem:[%s5024_s13 + $0x298] sm:$0xff]   ;;  %v4750_v25 = vld [vmem:[%s5024_s13 + $0x2a0] sm:$0xff]   ;;  %v4723_v26 = vld [vmem:[%s5024_s13 + $0x68] sm:$0xff]  }
  0x18   : > { %v4724_v27 = vld [vmem:[%s5024_s13 + $0x70] sm:$0xff]   ;;  %v4751_v28 = vld [vmem:[%s5024_s13 + $0x2a8] sm:$0xff]   ;;  %v4725_v30 = vld [vmem:[%s5024_s13 + $0x78] sm:$0xff]  }
  0x19   : > { %v4754_v29 = vld [vmem:[%s5024_s13 + $0x2b0] sm:$0xff]   ;;  %v4726_v31 = vld [vmem:[%s5024_s13 + $0x80] sm:$0xff]   ;;  %v4755_v32 = vld [vmem:[%s5024_s13 + $0x2b8] sm:$0xff]  }
  0x1a   : > { %v4758_v33 = vld [vmem:[%s5024_s13 + $0x2c0] sm:$0xff]   ;;  %v4727_v34 = vld [vmem:[%s5024_s13 + $0x88] sm:$0xff]   ;;  %v4728_v35 = vld [vmem:[%s5024_s13 + $0x90] sm:$0xff]  }
  0x1b   : > { %4399 = vmatmul.mubr.msk.bf16.gmra.mrb[4].mxu0 %vm1236_vm2, %v4713_v9  ;;  %v4759_v36 = vld [vmem:[%s5024_s13 + $0x2c8] sm:$0xff]   ;;  %v4762_v37 = vld [vmem:[%s5024_s13 + $0x2d0] sm:$0xff]   ;;  %v4729_v38 = vld [vmem:[%s5024_s13 + $0x98] sm:$0xff]  }
  0x1c   : > { %4402 = vmatprep.mubr.msk.bf16.mxu0 %vm1236_vm2, %v4714_v10  ;;  %v4730_v39 = vld [vmem:[%s5024_s13 + $0xa0] sm:$0xff]   ;;  %v4763_v40 = vld [vmem:[%s5024_s13 + $0x2d8] sm:$0xff]   ;;  %v4731_v42 = vld [vmem:[%s5024_s13 + $0xa8] sm:$0xff]  }
  0x1d   : > { %v4766_v41 = vld [vmem:[%s5024_s13 + $0x2e0] sm:$0xff]   ;;  %v4732_v43 = vld [vmem:[%s5024_s13 + $0xb0] sm:$0xff]   ;;  %v4767_v44 = vld [vmem:[%s5024_s13 + $0x2e8] sm:$0xff]  }
  0x1e   : > { %4555 = vmatmul.mubr.msk.bf16.gmra.mrb[4].mxu1 %vm1236_vm2, %v4743_v20  ;;  %v4770_v45 = vld [vmem:[%s5024_s13 + $0x2f0] sm:$0xff]   ;;  %v4733_v46 = vld [vmem:[%s5024_s13 + $0xb8] sm:$0xff]   ;;  %v4734_v47 = vld [vmem:[%s5024_s13 + $0xc0] sm:$0xff]  }
  0x1f   : > { %4558 = vmatprep.mubr.msk.bf16.mxu1 %vm1236_vm2, %v4746_v21  ;;  %v4771_v48 = vld [vmem:[%s5024_s13 + $0x2f8] sm:$0xff]   ;;  %v4774_v49 = vld [vmem:[%s5024_s13 + $0x300] sm:$0xff]   ;;  %v4735_v50 = vld [vmem:[%s5024_s13 + $0xc8] sm:$0xff]  }
  0x20   : > { %v4736_v51 = vld [vmem:[%s5024_s13 + $0xd0] sm:$0xff]   ;;  %v4775_v52 = vld [vmem:[%s5024_s13 + $0x308] sm:$0xff]   ;;  %v4737_v54 = vld [vmem:[%s5024_s13 + $0xd8] sm:$0xff]  }
  0x21   : > { %v4778_v53 = vld [vmem:[%s5024_s13 + $0x310] sm:$0xff]   ;;  %v4740_v55 = vld [vmem:[%s5024_s13 + $0xe0] sm:$0xff]   ;;  %v4779_v56 = vld [vmem:[%s5024_s13 + $0x318] sm:$0xff]  }
  0x22   : > { %v4782_v57 = vld [vmem:[%s5024_s13 + $0x320] sm:$0xff]   ;;  %v4741_v58 = vld [vmem:[%s5024_s13 + $0xe8] sm:$0xff]   ;;  %v4744_v59 = vld [vmem:[%s5024_s13 + $0xf0] sm:$0xff]  }
  0x23   : > { %4403 = vmatmul.mubr.msk.bf16.gmra.mrb[8].mxu0 %vm1236_vm2, %v4715_v11  ;;  %v4783_v60 = vld [vmem:[%s5024_s13 + $0x328] sm:$0xff]   ;;  %v4786_v61 = vld [vmem:[%s5024_s13 + $0x330] sm:$0xff]   ;;  %v4745_v62 = vld [vmem:[%s5024_s13 + $0xf8] sm:$0xff]  }
  0x24   : > { %4406 = vmatprep.mubr.msk.bf16.mxu0 %vm1236_vm2, %v4716_v12  ;;  %v4748_v63 = vld [vmem:[%s5024_s13 + $0x100] sm:$0xff]   ;;  %v4787_v0 = vld [vmem:[%s5024_s13 + $0x338] sm:$0xff]   ;;  %v4749_v2 = vld [vmem:[%s5024_s13 + $0x108] sm:$0xff]  }
  0x25   : > { %v4790_v1 = vld [vmem:[%s5024_s13 + $0x340] sm:$0xff]   ;;  %v4752_v3 = vld [vmem:[%s5024_s13 + $0x110] sm:$0xff]   ;;  %v4791_v4 = vld [vmem:[%s5024_s13 + $0x348] sm:$0xff]  }
  0x26   : > { %4559 = vmatmul.mubr.msk.bf16.gmra.mrb[8].mxu1 %vm1236_vm2, %v4747_v24  ;;  %v4794_v5 = vld [vmem:[%s5024_s13 + $0x350] sm:$0xff]   ;;  %v4753_v6 = vld [vmem:[%s5024_s13 + $0x118] sm:$0xff]   ;;  %v4756_v7 = vld [vmem:[%s5024_s13 + $0x120] sm:$0xff]  }
  0x27   : > { %4562 = vmatprep.mubr.msk.bf16.mxu1 %vm1236_vm2, %v4750_v25  ;;  %v4795_v8 = vld [vmem:[%s5024_s13 + $0x358] sm:$0xff]   ;;  %v4798_v9 = vld [vmem:[%s5024_s13 + $0x360] sm:$0xff]   ;;  %v4757_v10 = vld [vmem:[%s5024_s13 + $0x128] sm:$0xff]  }
  0x28   : > { %v4760_v11 = vld [vmem:[%s5024_s13 + $0x130] sm:$0xff]   ;;  %v4799_v12 = vld [vmem:[%s5024_s13 + $0x368] sm:$0xff]   ;;  %v4764_v15 = vld [vmem:[%s5024_s13 + $0x140] sm:$0xff]  }
  0x29   : > { %v4803_v16 = vld [vmem:[%s5024_s13 + $0x378] sm:$0xff]   ;;  %v4768_v19 = vld [vmem:[%s5024_s13 + $0x150] sm:$0xff]   ;;  %v4807_v20 = vld [vmem:[%s5024_s13 + $0x388] sm:$0xff]  }
  0x2a   : > { %v4810_v21 = vld [vmem:[%s5024_s13 + $0x390] sm:$0xff]   ;;  %v4811_v24 = vld [vmem:[%s5024_s13 + $0x398] sm:$0xff]   ;;  %v4814_v25 = vld [vmem:[%s5024_s13 + $0x3a0] sm:$0xff]  }
  0x2b   : > { %4407 = vmatmul.mubr.msk.bf16.gmra.mrb[12].mxu0 %vm1236_vm2, %v4717_v13  ;;  %v4802_v13 = vld [vmem:[%s5024_s13 + $0x370] sm:$0xff]  }
  0x2c   : > { %4410 = vmatprep.mubr.msk.bf16.mxu0 %vm1236_vm2, %v4718_v14  ;;  %v4761_v14 = vld [vmem:[%s5024_s13 + $0x138] sm:$0xff]  }
  0x2e   : > { %4563 = vmatmul.mubr.msk.bf16.gmra.mrb[12].mxu1 %vm1236_vm2, %v4751_v28  ;;  %v4815_v28 = vld [vmem:[%s5024_s13 + $0x3a8] sm:$0xff]  }
  0x2f   : > { %4566 = vmatprep.mubr.msk.bf16.mxu1 %vm1236_vm2, %v4754_v29  ;;  %v4818_v29 = vld [vmem:[%s5024_s13 + $0x3b0] sm:$0xff]  }
  0x33   : > { %4411 = vmatmul.mubr.msk.bf16.gmra.mrb[16].mxu0 %vm1236_vm2, %v4719_v17  ;;  %v4806_v17 = vld [vmem:[%s5024_s13 + $0x380] sm:$0xff]  }
  0x34   : > { %4414 = vmatprep.mubr.msk.bf16.mxu0 %vm1236_vm2, %v4720_v18  ;;  %v4765_v18 = vld [vmem:[%s5024_s13 + $0x148] sm:$0xff]  }
  0x36   : > { %4567 = vmatmul.mubr.msk.bf16.gmra.mrb[16].mxu1 %vm1236_vm2, %v4755_v32  ;;  %v4819_v32 = vld [vmem:[%s5024_s13 + $0x3b8] sm:$0xff]  }
  0x37   : > { %4570 = vmatprep.mubr.msk.bf16.mxu1 %vm1236_vm2, %v4758_v33  ;;  %v4822_v33 = vld [vmem:[%s5024_s13 + $0x3c0] sm:$0xff]  }
  0x3b   : > { %4415 = vmatmul.mubr.msk.bf16.gmra.mrb[20].mxu0 %vm1236_vm2, %v4721_v22  ;;  %v4769_v22 = vld [vmem:[%s5024_s13 + $0x158] sm:$0xff]  }
  0x3c   : > { %4418 = vmatprep.mubr.msk.bf16.mxu0 %vm1236_vm2, %v4722_v23  ;;  %v4772_v23 = vld [vmem:[%s5024_s13 + $0x160] sm:$0xff]  }
  0x3e   : > { %4571 = vmatmul.mubr.msk.bf16.gmra.mrb[20].mxu1 %vm1236_vm2, %v4759_v36  ;;  %v4823_v36 = vld [vmem:[%s5024_s13 + $0x3c8] sm:$0xff]  }
  0x3f   : > { %4574 = vmatprep.mubr.msk.bf16.mxu1 %vm1236_vm2, %v4762_v37  ;;  %v4826_v37 = vld [vmem:[%s5024_s13 + $0x3d0] sm:$0xff]  }
  0x43   : > { %4419 = vmatmul.mubr.msk.bf16.gmra.mrb[24].mxu0 %vm1236_vm2, %v4723_v26  ;;  %v4773_v26 = vld [vmem:[%s5024_s13 + $0x168] sm:$0xff]  }
  0x44   : > { %4422 = vmatprep.mubr.msk.bf16.mxu0 %vm1236_vm2, %v4724_v27  ;;  %v4776_v27 = vld [vmem:[%s5024_s13 + $0x170] sm:$0xff]  }
  0x46   : > { %4575 = vmatmul.mubr.msk.bf16.gmra.mrb[24].mxu1 %vm1236_vm2, %v4763_v40  ;;  %v4827_v40 = vld [vmem:[%s5024_s13 + $0x3d8] sm:$0xff]  }
  0x47   : > { %4578 = vmatprep.mubr.msk.bf16.mxu1 %vm1236_vm2, %v4766_v41  ;;  %v4830_v41 = vld [vmem:[%s5024_s13 + $0x3e0] sm:$0xff]  }
  0x4b   : > { %4423 = vmatmul.mubr.msk.bf16.gmra.mrb[28].mxu0 %vm1236_vm2, %v4725_v30  ;;  %v4777_v30 = vld [vmem:[%s5024_s13 + $0x178] sm:$0xff]  }
  0x4c   : > { %4426 = vmatprep.mubr.msk.bf16.mxu0 %vm1236_vm2, %v4726_v31  ;;  %v4780_v31 = vld [vmem:[%s5024_s13 + $0x180] sm:$0xff]  }
  0x4e   : > { %4579 = vmatmul.mubr.msk.bf16.gmra.mrb[28].mxu1 %vm1236_vm2, %v4767_v44  ;;  %v4831_v44 = vld [vmem:[%s5024_s13 + $0x3e8] sm:$0xff]  }
  0x4f   : > { %4582 = vmatprep.mubr.msk.bf16.mxu1 %vm1236_vm2, %v4770_v45  ;;  %v4834_v45 = vld [vmem:[%s5024_s13 + $0x3f0] sm:$0xff]  }
  0x53   : > { %4427 = vmatmul.mubr.msk.bf16.gmra.mrb[32].mxu0 %vm1236_vm2, %v4727_v34  ;;  %v4781_v34 = vld [vmem:[%s5024_s13 + $0x188] sm:$0xff]  }
  0x54   : > { %4430 = vmatprep.mubr.msk.bf16.mxu0 %vm1236_vm2, %v4728_v35  ;;  %v4784_v35 = vld [vmem:[%s5024_s13 + $0x190] sm:$0xff]  }
  0x56   : > { %4583 = vmatmul.mubr.msk.bf16.gmra.mrb[32].mxu1 %vm1236_vm2, %v4771_v48 }
  0x57   : > { %4586 = vmatprep.mubr.msk.bf16.mxu1 %vm1236_vm2, %v4774_v49  ;;  %v4793_v49 = vld [vmem:[%s5024_s13 + $0x1b8] sm:$0xff]  }
  0x5b   : > { %4431 = vmatmul.mubr.msk.bf16.gmra.mrb[36].mxu0 %vm1236_vm2, %v4729_v38  ;;  %v4785_v38 = vld [vmem:[%s5024_s13 + $0x198] sm:$0xff]  }
  0x5c   : > { %4434 = vmatprep.mubr.msk.bf16.mxu0 %vm1236_vm2, %v4730_v39  ;;  %v4788_v39 = vld [vmem:[%s5024_s13 + $0x1a0] sm:$0xff]  }
  0x5e   : > { %4587 = vmatmul.mubr.msk.bf16.gmra.mrb[36].mxu1 %vm1236_vm2, %v4775_v52  ;;  %v4796_v52 = vld [vmem:[%s5024_s13 + $0x1c0] sm:$0xff]  }
  0x5f   : > { %4590 = vmatprep.mubr.msk.bf16.mxu1 %vm1236_vm2, %v4778_v53 }
  0x63   : > { %4435 = vmatmul.mubr.msk.bf16.gmra.mrb[40].mxu0 %vm1236_vm2, %v4731_v42  ;;  %v4789_v42 = vld [vmem:[%s5024_s13 + $0x1a8] sm:$0xff]  }
  0x64   : > { %4438 = vmatprep.mubr.msk.bf16.mxu0 %vm1236_vm2, %v4732_v43  ;;  %v4792_v43 = vld [vmem:[%s5024_s13 + $0x1b0] sm:$0xff]  }
  0x66   : > { %4591 = vmatmul.mubr.msk.bf16.gmra.mrb[40].mxu1 %vm1236_vm2, %v4779_v56  ;;  %v4835_v56 = vld [vmem:[%s5024_s13 + $0x3f8] sm:$0xff]  }
  0x67   : > { %4594 = vmatprep.mubr.msk.bf16.mxu1 %vm1236_vm2, %v4782_v57 }
  0x6b   : > { %4439 = vmatmul.mubr.msk.bf16.gmra.mrb[44].mxu0 %vm1236_vm2, %v4733_v46  ;;  %v5235_v46 = vld [vmem:[%s5805_s2] ss:$0 sm:$0xff] }
  0x6c   : > { %4442 = vmatprep.mubr.msk.bf16.mxu0 %vm1236_vm2, %v4734_v47 }
  0x6e   : > { %4595 = vmatmul.mubr.msk.bf16.gmra.mrb[44].mxu1 %vm1236_vm2, %v4783_v60 }
  0x6f   : > { %4598 = vmatprep.mubr.msk.bf16.mxu1 %vm1236_vm2, %v4786_v61 }
  0x73   : > { %4443 = vmatmul.mubr.msk.bf16.gmra.mrb[48].mxu0 %vm1236_vm2, %v4735_v50 }
  0x74   : > { %4446 = vmatprep.mubr.msk.bf16.mxu0 %vm1236_vm2, %v4736_v51 }
  0x76   : > { %4599 = vmatmul.mubr.msk.bf16.gmra.mrb[48].mxu1 %vm1236_vm2, %v4787_v0  ;;  %v4797_v0 = vld [vmem:[%s5024_s13 + $0x1c8] sm:$0xff]  }
  0x77   : > { %4602 = vmatprep.mubr.msk.bf16.mxu1 %vm1236_vm2, %v4790_v1 }
  0x7b   : > { %4447 = vmatmul.mubr.msk.bf16.gmra.mrb[52].mxu0 %vm1236_vm2, %v4737_v54 }
  0x7c   : > { %4450 = vmatprep.mubr.msk.bf16.mxu0 %vm1236_vm2, %v4740_v55 }
  0x7e   : > { %4603 = vmatmul.mubr.msk.bf16.gmra.mrb[52].mxu1 %vm1236_vm2, %v4791_v4 }
  0x7f   : > { %4606 = vmatprep.mubr.msk.bf16.mxu1 %vm1236_vm2, %v4794_v5  ;;  %v4800_v5 = vld [vmem:[%s5024_s13 + $0x1d0] sm:$0xff]  }
  0x83   : > { %4451 = vmatmul.mubr.msk.bf16.gmra.mrb[56].mxu0 %vm1236_vm2, %v4741_v58 }
  0x84   : > { %4454 = vmatprep.mubr.msk.bf16.mxu0 %vm1236_vm2, %v4744_v59 }
  0x86   : > { %4607 = vmatmul.mubr.msk.bf16.gmra.mrb[56].mxu1 %vm1236_vm2, %v4795_v8 }
  0x87   : > { %4610 = vmatprep.mubr.msk.bf16.mxu1 %vm1236_vm2, %v4798_v9 }
  0x8b   : > { %4455 = vmatmul.mubr.msk.bf16.gmra.mrb[60].mxu0 %vm1236_vm2, %v4745_v62 }
  0x8c   : > { %4458 = vmatprep.mubr.msk.bf16.mxu0 %vm1236_vm2, %v4748_v63 }
  0x8e   : > { %4611 = vmatmul.mubr.msk.bf16.gmra.mrb[60].mxu1 %vm1236_vm2, %v4799_v12 }
  0x8f   : > { %4614 = vmatprep.mubr.msk.bf16.mxu1 %vm1236_vm2, %v4802_v13 }
  0x93   : > { %4459 = vmatmul.mubr.msk.bf16.gmra.mrb[64].mxu0 %vm1236_vm2, %v4749_v2 }
  0x94   : > { %4462 = vmatprep.mubr.msk.bf16.mxu0 %vm1236_vm2, %v4752_v3 }
  0x96   : > { %4615 = vmatmul.mubr.msk.bf16.gmra.mrb[64].mxu1 %vm1236_vm2, %v4803_v16 }
  0x97   : > { %4618 = vmatprep.mubr.msk.bf16.mxu1 %vm1236_vm2, %v4806_v17 }
  0x9b   : > { %4463 = vmatmul.mubr.msk.bf16.gmra.mrb[68].mxu0 %vm1236_vm2, %v4753_v6 }
  0x9c   : > { %4466 = vmatprep.mubr.msk.bf16.mxu0 %vm1236_vm2, %v4756_v7 }
  0x9e   : > { %4619 = vmatmul.mubr.msk.bf16.gmra.mrb[68].mxu1 %vm1236_vm2, %v4807_v20 }
  0x9f   : > { %4622 = vmatprep.mubr.msk.bf16.mxu1 %vm1236_vm2, %v4810_v21 }
  0xa3   : > { %4467 = vmatmul.mubr.msk.bf16.gmra.mrb[72].mxu0 %vm1236_vm2, %v4757_v10 }
  0xa4   : > { %4470 = vmatprep.mubr.msk.bf16.mxu0 %vm1236_vm2, %v4760_v11 }
  0xa6   : > { %4623 = vmatmul.mubr.msk.bf16.gmra.mrb[72].mxu1 %vm1236_vm2, %v4811_v24  ;;  %v4838_v24 = vld [vmem:[%s5806_s3] ss:$12 sps:$4 sm:$0xff]  }
  0xa7   : > { %4626 = vmatprep.mubr.msk.bf16.mxu1 %vm1236_vm2, %v4814_v25  ;;  %v4840_v25 = vld [vmem:[%s5806_s3 + $0x4] ss:$12 sps:$4 sm:$0xff]  }
  0xa8   : > { %3445 = vmatprep.subr.bf16.mxu1 %v4840_v25  ;;  %v4813_v25 = vld [vmem:[%s5024_s13 + $0x208] sm:$0xff]  }
  0xa9   : > { %3446 = vmatpush1.bf16.msra.mxu1 %v4838_v24 }
  0xab   : > { %4471 = vmatmul.mubr.msk.bf16.gmra.mrb[76].mxu0 %vm1236_vm2, %v4761_v14 }
  0xac   : > { %4474 = vmatprep.mubr.msk.bf16.mxu0 %vm1236_vm2, %v4764_v15 }
  0xae   : > { %4627 = vmatmul.mubr.msk.bf16.gmra.mrb[76].mxu1 %vm1236_vm2, %v4815_v28 }
  0xaf   : > { %4630 = vmatprep.mubr.msk.bf16.mxu1 %vm1236_vm2, %v4818_v29 }
  0xb3   : > { %4475 = vmatmul.mubr.msk.bf16.gmra.mrb[80].mxu0 %vm1236_vm2, %v4765_v18  ;;  %v4801_v18 = vld [vmem:[%s5024_s13 + $0x1d8] sm:$0xff]  }
  0xb4   : > { %4478 = vmatprep.mubr.msk.bf16.mxu0 %vm1236_vm2, %v4768_v19  ;;  %v4804_v19 = vld [vmem:[%s5024_s13 + $0x1e0] sm:$0xff]  }
  0xb6   : > { %4631 = vmatmul.mubr.msk.bf16.gmra.mrb[80].mxu1 %vm1236_vm2, %v4819_v32 }
  0xb7   : > { %4634 = vmatprep.mubr.msk.bf16.mxu1 %vm1236_vm2, %v4822_v33 }
  0xbb   : > { %4479 = vmatmul.mubr.msk.bf16.gmra.mrb[84].mxu0 %vm1236_vm2, %v4769_v22 }
  0xbc   : > { %4482 = vmatprep.mubr.msk.bf16.mxu0 %vm1236_vm2, %v4772_v23 }
  0xbe   : > { %4635 = vmatmul.mubr.msk.bf16.gmra.mrb[84].mxu1 %vm1236_vm2, %v4823_v36 }
  0xbf   : > { %4638 = vmatprep.mubr.msk.bf16.mxu1 %vm1236_vm2, %v4826_v37 }
  0xc3   : > { %4483 = vmatmul.mubr.msk.bf16.gmra.mrb[88].mxu0 %vm1236_vm2, %v4773_v26 }
  0xc4   : > { %4486 = vmatprep.mubr.msk.bf16.mxu0 %vm1236_vm2, %v4776_v27 }
  0xc6   : > { %4639 = vmatmul.mubr.msk.bf16.gmra.mrb[88].mxu1 %vm1236_vm2, %v4827_v40 }
  0xc7   : > { %4642 = vmatprep.mubr.msk.bf16.mxu1 %vm1236_vm2, %v4830_v41 }
  0xcb   : > { %4487 = vmatmul.mubr.msk.bf16.gmra.mrb[92].mxu0 %vm1236_vm2, %v4777_v30 }
  0xcc   : > { %4490 = vmatprep.mubr.msk.bf16.mxu0 %vm1236_vm2, %v4780_v31 }
  0xce   : > { %4643 = vmatmul.mubr.msk.bf16.gmra.mrb[92].mxu1 %vm1236_vm2, %v4831_v44 }
  0xcf   : > { %4646 = vmatprep.mubr.msk.bf16.mxu1 %vm1236_vm2, %v4834_v45 }
  0xd3   : > { %4491 = vmatmul.mubr.msk.bf16.gmra.mrb[96].mxu0 %vm1236_vm2, %v4781_v34 }
  0xd4   : > { %4494 = vmatprep.mubr.msk.bf16.mxu0 %vm1236_vm2, %v4784_v35 }
  0xd6   : > { %4647 = vmatmul.mubr.msk.bf16.gmra.mrb[96].mxu1 %vm1236_vm2, %v4835_v56 }
  0xdb   : > { %4495 = vmatmul.mubr.msk.bf16.gmra.mrb[100].mxu0 %vm1236_vm2, %v4785_v38  ;;  %v4805_v38 = vld [vmem:[%s5024_s13 + $0x1e8] sm:$0xff]  }
  0xdc   : > { %4498 = vmatprep.mubr.msk.bf16.mxu0 %vm1236_vm2, %v4788_v39 }
  0xe3   : > { %4499 = vmatmul.mubr.msk.bf16.gmra.mrb[104].mxu0 %vm1236_vm2, %v4789_v42 }
  0xe4   : > { %4502 = vmatprep.mubr.msk.bf16.mxu0 %vm1236_vm2, %v4792_v43  ;;  %v4808_v43 = vld [vmem:[%s5024_s13 + $0x1f0] sm:$0xff]  }
  0xe6   : > { %v4396_v47 = vpop.f32.mrb[0].mxu0 }
  0xe7   : > { %v1662_v48 = vpop.f32.mrb[1].mxu0  ;;  %v1671_v54 = vadd.f32 %v4396_v47, %v5235_v46 }
  0xe8   : > { %v1663_v50 = vadd.f32 %v5235_v46, %v1662_v48  ;;  %v4397_v51 = vpop.f32.mrb[2].mxu0 }
  0xe9   : > { %v1665_v53 = vpop.f32.mrb[3].mxu0  ;;  %v1674_v58 = vadd.f32 %v4397_v51, %v5235_v46  ;;  %v2687_v60 = vmax.f32 %v1671_v54, 0.0 }
  0xea   : > { %v1666_v55 = vadd.f32 %v5235_v46, %v1665_v53  ;;  %v2685_v57 = vmax.f32 %v1663_v50, 0.0  ;;  %v5276_v50 = vpop.f32.mrb[0].mxu1 }
  0xeb   : > { %4503 = vmatmul.mubr.msk.bf16.gmra.mrb[108].mxu0 %vm1236_vm2, %v4793_v49  ;;  %v2688_v1 = vmax.f32 %v1674_v58, 0.0  ;;  %v5279_v51 = vpop.f32.mrb[1].mxu1 }
  0xec   : > { %v2686_v59 = vmax.f32 %v1666_v55, 0.0  ;;  %4506 = vmatprep.mubr.msk.bf16.mxu0 %vm1236_vm2, %v4796_v52  ;;  %v5283_v55 = vpop.f32.mrb[2].mxu1 }
  0xed   : > { %v5285_v56 = vpop.f32.mrb[3].mxu1 }
  0xee   : > { %v2942_v61 = vadd.f32 %v2686_v59, %v2685_v57  ;;  %v4400_v62 = vpop.f32.mrb[4].mxu0 }
  0xef   : > { %v1678_v63 = vpop.f32.mrb[5].mxu0  ;;  %v1687_v7 = vadd.f32 %v4400_v62, %v5235_v46 }
  0xf0   : > { %v2943_v2 = vadd.f32 %v2942_v61, %v2687_v60  ;;  %v1679_v3 = vadd.f32 %v5235_v46, %v1678_v63  ;;  %v4401_v4 = vpop.f32.mrb[6].mxu0  ;;  %v4809_v61 = vld [vmem:[%s5024_s13 + $0x1f8] sm:$0xff]  }
  0xf1   : > { %v1681_v6 = vpop.f32.mrb[7].mxu0  ;;  %v1690_v12 = vadd.f32 %v4401_v4, %v5235_v46  ;;  %v2691_v14 = vmax.f32 %v1687_v7, 0.0 }
  0xf2   : > { %v2689_v8 = vmax.f32 %v1679_v3, 0.0  ;;  %v2944_v9 = vadd.f32 %v2943_v2, %v2688_v1  ;;  %v1682_v10 = vadd.f32 %v5235_v46, %v1681_v6  ;;  %v4812_v2 = vld [vmem:[%s5024_s13 + $0x200] sm:$0xff]  }
  0xf3   : > { %4507 = vmatmul.mubr.msk.bf16.gmra.mrb[112].mxu0 %vm1236_vm2, %v4797_v0  ;;  %v2692_v20 = vmax.f32 %v1690_v12, 0.0 }
  0xf4   : > { %v2945_v11 = vadd.f32 %v2944_v9, %v2689_v8  ;;  %v2690_v13 = vmax.f32 %v1682_v10, 0.0  ;;  %4510 = vmatprep.mubr.msk.bf16.mxu0 %vm1236_vm2, %v4800_v5  ;;  %v4556_v8 = vpop.f32.mrb[4].mxu1 }
  0xf5   : > { %v2302_v10 = vpop.f32.mrb[5].mxu1 }
  0xf6   : > { %v2946_v15 = vadd.f32 %v2945_v11, %v2690_v13  ;;  %v4404_v16 = vpop.f32.mrb[8].mxu0  ;;  %v2311_v13 = vadd.f32 %v4556_v8, %v5235_v46 }
  0xf7   : > { %v1694_v17 = vpop.f32.mrb[9].mxu0  ;;  %v1703_v27 = vadd.f32 %v4404_v16, %v5235_v46 }
  0xf8   : > { %v2947_v21 = vadd.f32 %v2946_v15, %v2691_v14  ;;  %v1695_v22 = vadd.f32 %v5235_v46, %v1694_v17  ;;  %v4405_v23 = vpop.f32.mrb[10].mxu0  ;;  %v2303_v14 = vadd.f32 %v5235_v46, %v2302_v10  ;;  %v4557_v15 = vpop.f32.mrb[6].mxu1 }
  0xf9   : > { %v1697_v26 = vpop.f32.mrb[11].mxu0  ;;  %v1706_v32 = vadd.f32 %v4405_v23, %v5235_v46  ;;  %v2695_v34 = vmax.f32 %v1703_v27, 0.0  ;;  %v2314_v16 = vadd.f32 %v4557_v15, %v5235_v46  ;;  %v2305_v17 = vpop.f32.mrb[7].mxu1 }
  0xfa   : > { %v2693_v28 = vmax.f32 %v1695_v22, 0.0  ;;  %v2948_v29 = vadd.f32 %v2947_v21, %v2692_v20  ;;  %v1698_v30 = vadd.f32 %v5235_v46, %v1697_v26  ;;  %v2845_v21 = vmax.f32 %v2303_v14, 0.0 }
  0xfb   : > { %4511 = vmatmul.mubr.msk.bf16.gmra.mrb[116].mxu0 %vm1236_vm2, %v4801_v18  ;;  %v2696_v39 = vmax.f32 %v1706_v32, 0.0  ;;  %v2306_v22 = vadd.f32 %v5235_v46, %v2305_v17 }
  0xfc   : > { %v2949_v31 = vadd.f32 %v2948_v29, %v2693_v28  ;;  %v2694_v33 = vmax.f32 %v1698_v30, 0.0  ;;  %4514 = vmatprep.mubr.msk.bf16.mxu0 %vm1236_vm2, %v4804_v19  ;;  %v4816_v29 = vld [vmem:[%s5024_s13 + $0x210] sm:$0xff]   ;;  %v2847_v30 = vmax.f32 %v2311_v13, 0.0 }
  0xfe   : > { %v2950_v35 = vadd.f32 %v2949_v31, %v2694_v33  ;;  %v4408_v36 = vpop.f32.mrb[12].mxu0  ;;  %v2846_v31 = vmax.f32 %v2306_v22, 0.0 }
  0xff   : > { %v1710_v37 = vpop.f32.mrb[13].mxu0  ;;  %v1719_v45 = vadd.f32 %v4408_v36, %v5235_v46  ;;  %v4843_v36 = vld [vmem:[%s5806_s3 + $0x1c] ss:$12 sps:$4 sm:$0xff]  }
 0x100   : > { %v2951_v40 = vadd.f32 %v2950_v35, %v2695_v34  ;;  %v1711_v41 = vadd.f32 %v5235_v46, %v1710_v37  ;;  %v4409_v42 = vpop.f32.mrb[14].mxu0  ;;  %v2848_v34 = vmax.f32 %v2314_v16, 0.0  ;;  %v4841_v35 = vld [vmem:[%s5806_s3 + $0x18] ss:$12 sps:$4 sm:$0xff]   ;;  %3447 = vmatprep.subr.bf16.mxu1 %v4843_v36 }
 0x101   : > { %v1713_v44 = vpop.f32.mrb[15].mxu0  ;;  %v1722_v53 = vadd.f32 %v4409_v42, %v5235_v46  ;;  %v2699_v57 = vmax.f32 %v1719_v45, 0.0  ;;  %3448 = vmatpush1.bf16.msra.mxu1 %v4841_v35  ;;  %v4821_v35 = vld [vmem:[%s5024_s13 + $0x228] sm:$0xff]  }
 0x102   : > { %v2697_v47 = vmax.f32 %v1711_v41, 0.0  ;;  %v2952_v48 = vadd.f32 %v2951_v40, %v2696_v39  ;;  %v1714_v49 = vadd.f32 %v5235_v46, %v1713_v44  ;;  %v3127_v40 = vadd.f32 %v2846_v31, %v2845_v21  ;;  %v4560_v41 = vpop.f32.mrb[8].mxu1 }
 0x103   : > { %4515 = vmatmul.mubr.msk.bf16.gmra.mrb[120].mxu0 %vm1236_vm2, %v4805_v38  ;;  %v2700_v62 = vmax.f32 %v1722_v53, 0.0  ;;  %v2318_v44 = vpop.f32.mrb[9].mxu1 }
 0x104   : > { %v2953_v52 = vadd.f32 %v2952_v48, %v2697_v47  ;;  %v2698_v54 = vmax.f32 %v1714_v49, 0.0  ;;  %4518 = vmatprep.mubr.msk.bf16.mxu0 %vm1236_vm2, %v4808_v43  ;;  %v2327_v43 = vadd.f32 %v4560_v41, %v5235_v46  ;;  %v3128_v48 = vadd.f32 %v3127_v40, %v2847_v30  ;;  %v4824_v40 = vld [vmem:[%s5024_s13 + $0x230] sm:$0xff]  }
 0x105   : > { %v2319_v49 = vadd.f32 %v5235_v46, %v2318_v44 }
 0x106   : > { %v2954_v58 = vadd.f32 %v2953_v52, %v2698_v54  ;;  %v4412_v59 = vpop.f32.mrb[16].mxu0  ;;  %v4561_v52 = vpop.f32.mrb[10].mxu1 }
 0x107   : > { %v1726_v60 = vpop.f32.mrb[17].mxu0  ;;  %v1735_v4 = vadd.f32 %v4412_v59, %v5235_v46  ;;  %v2330_v54 = vadd.f32 %v4561_v52, %v5235_v46 }
 0x108   : > { %v2955_v63 = vadd.f32 %v2954_v58, %v2699_v57  ;;  %v1727_v0 = vadd.f32 %v5235_v46, %v1726_v60  ;;  %v4413_v1 = vpop.f32.mrb[18].mxu0  ;;  %v2321_v57 = vpop.f32.mrb[11].mxu1  ;;  %v2849_v60 = vmax.f32 %v2319_v49, 0.0 }
 0x109   : > { %v1729_v3 = vpop.f32.mrb[19].mxu0  ;;  %v1738_v9 = vadd.f32 %v4413_v1, %v5235_v46  ;;  %v2703_v18 = vmax.f32 %v1735_v4, 0.0  ;;  %v4817_v1 = vld [vmem:[%s5024_s13 + $0x218] sm:$0xff]   ;;  %v4564_v16 = vpop.f32.mrb[12].mxu1 }
 0x10a   : > { %v2701_v5 = vmax.f32 %v1727_v0, 0.0  ;;  %v2956_v6 = vadd.f32 %v2955_v63, %v2700_v62  ;;  %v1730_v7 = vadd.f32 %v5235_v46, %v1729_v3  ;;  %v2322_v62 = vadd.f32 %v5235_v46, %v2321_v57 }
 0x10b   : > { %4519 = vmatmul.mubr.msk.bf16.gmra.mrb[124].mxu0 %vm1236_vm2, %v4809_v61  ;;  %v2704_v23 = vmax.f32 %v1738_v9, 0.0  ;;  %v3129_v61 = vadd.f32 %v3128_v48, %v2848_v34 }
 0x10c   : > { %v2957_v11 = vadd.f32 %v2956_v6, %v2701_v5  ;;  %v2702_v12 = vmax.f32 %v1730_v7, 0.0  ;;  %4522 = vmatprep.mubr.msk.bf16.mxu0 %vm1236_vm2, %v4812_v2  ;;  %v2851_v2 = vmax.f32 %v2327_v43, 0.0  ;;  %v4820_v6 = vld [vmem:[%s5024_s13 + $0x220] sm:$0xff]   ;;  %v2850_v8 = vmax.f32 %v2322_v62, 0.0 }
 0x10d   : > { %v3130_v7 = vadd.f32 %v3129_v61, %v2849_v60 }
 0x10e   : > { %v2958_v19 = vadd.f32 %v2957_v11, %v2702_v12  ;;  %v4416_v20 = vpop.f32.mrb[20].mxu0  ;;  %v2852_v11 = vmax.f32 %v2330_v54, 0.0 }
 0x10f   : > { %v1742_v24 = vpop.f32.mrb[21].mxu0  ;;  %v1751_v32 = vadd.f32 %v4416_v20, %v5235_v46  ;;  %v3131_v15 = vadd.f32 %v3130_v7, %v2850_v8 }
 0x110   : > { %v2959_v26 = vadd.f32 %v2958_v19, %v2703_v18  ;;  %v1743_v27 = vadd.f32 %v5235_v46, %v1742_v24  ;;  %v4417_v28 = vpop.f32.mrb[22].mxu0  ;;  %v2343_v18 = vadd.f32 %v4564_v16, %v5235_v46  ;;  %v2334_v19 = vpop.f32.mrb[13].mxu1 }
 0x111   : > { %v1745_v33 = vpop.f32.mrb[23].mxu0  ;;  %v1754_v42 = vadd.f32 %v4417_v28, %v5235_v46  ;;  %v2707_v53 = vmax.f32 %v1751_v32, 0.0  ;;  %v3132_v22 = vadd.f32 %v3131_v15, %v2851_v2  ;;  %v4565_v24 = vpop.f32.mrb[14].mxu1  ;;  %v4828_v15 = vld [vmem:[%s5024_s13 + $0x240] sm:$0xff]  }
 0x112   : > { %v2705_v37 = vmax.f32 %v1743_v27, 0.0  ;;  %v2960_v38 = vadd.f32 %v2959_v26, %v2704_v23  ;;  %v1746_v39 = vadd.f32 %v5235_v46, %v1745_v33  ;;  %v2335_v23 = vadd.f32 %v5235_v46, %v2334_v19  ;;  %v2337_v27 = vpop.f32.mrb[15].mxu1 }
 0x113   : > { %4523 = vmatmul.mubr.msk.bf16.gmra.mrb[128].mxu0 %vm1236_vm2, %v4813_v25  ;;  %v2708_v63 = vmax.f32 %v1754_v42, 0.0  ;;  %v2346_v26 = vadd.f32 %v4565_v24, %v5235_v46  ;;  %v3133_v31 = vadd.f32 %v3132_v22, %v2852_v11  ;;  %v2338_v32 = vadd.f32 %v5235_v46, %v2337_v27 }
 0x114   : > { %v2961_v45 = vadd.f32 %v2960_v38, %v2705_v37  ;;  %v2706_v47 = vmax.f32 %v1746_v39, 0.0  ;;  %4526 = vmatprep.mubr.msk.bf16.mxu0 %vm1236_vm2, %v4816_v29  ;;  %v2853_v30 = vmax.f32 %v2335_v23, 0.0  ;;  %v2855_v36 = vmax.f32 %v2343_v18, 0.0 }
 0x115   : > { %v2854_v42 = vmax.f32 %v2338_v32, 0.0 }
 0x116   : > { %v2962_v58 = vadd.f32 %v2961_v45, %v2706_v47  ;;  %v4420_v59 = vpop.f32.mrb[24].mxu0  ;;  %v3134_v41 = vadd.f32 %v3133_v31, %v2853_v30  ;;  %v2856_v45 = vmax.f32 %v2346_v26, 0.0 }
 0x117   : > { %v1758_v0 = vpop.f32.mrb[25].mxu0  ;;  %v1767_v9 = vadd.f32 %v4420_v59, %v5235_v46 }
 0x118   : > { %v2963_v3 = vadd.f32 %v2962_v58, %v2707_v53  ;;  %v1759_v4 = vadd.f32 %v5235_v46, %v1758_v0  ;;  %v4421_v5 = vpop.f32.mrb[26].mxu0  ;;  %v3135_v52 = vadd.f32 %v3134_v41, %v2854_v42  ;;  %v4568_v53 = vpop.f32.mrb[16].mxu1 }
 0x119   : > { %v1761_v10 = vpop.f32.mrb[27].mxu0  ;;  %v1770_v17 = vadd.f32 %v4421_v5, %v5235_v46  ;;  %v2711_v25 = vmax.f32 %v1767_v9, 0.0  ;;  %v2359_v57 = vadd.f32 %v4568_v53, %v5235_v46  ;;  %v2350_v58 = vpop.f32.mrb[17].mxu1 }
 0x11a   : > { %v2709_v12 = vmax.f32 %v1759_v4, 0.0  ;;  %v2964_v13 = vadd.f32 %v2963_v3, %v2708_v63  ;;  %v1762_v14 = vadd.f32 %v5235_v46, %v1761_v10  ;;  %v3136_v61 = vadd.f32 %v3135_v52, %v2855_v36  ;;  %v4569_v63 = vpop.f32.mrb[18].mxu1  ;;  %v4825_v10 = vld [vmem:[%s5024_s13 + $0x238] sm:$0xff]  }
 0x11b   : > { %4527 = vmatmul.mubr.msk.bf16.gmra.mrb[132].mxu0 %vm1236_vm2, %v4817_v1  ;;  %v2712_v33 = vmax.f32 %v1770_v17, 0.0  ;;  %v2351_v62 = vadd.f32 %v5235_v46, %v2350_v58  ;;  %v2362_v1 = vadd.f32 %v4569_v63, %v5235_v46  ;;  %v2353_v2 = vpop.f32.mrb[19].mxu1  ;;  %v2859_v11 = vmax.f32 %v2359_v57, 0.0 }
 0x11c   : > { %v2965_v20 = vadd.f32 %v2964_v13, %v2709_v12  ;;  %v2710_v21 = vmax.f32 %v1762_v14, 0.0  ;;  %4530 = vmatprep.mubr.msk.bf16.mxu0 %vm1236_vm2, %v4820_v6  ;;  %v3137_v6 = vadd.f32 %v3136_v61, %v2856_v45  ;;  %v2354_v7 = vadd.f32 %v5235_v46, %v2353_v2  ;;  %v4572_v24 = vpop.f32.mrb[20].mxu1 }
 0x11d   : > { %v2857_v5 = vmax.f32 %v2351_v62, 0.0  ;;  %v2860_v22 = vmax.f32 %v2362_v1, 0.0  ;;  %v2366_v26 = vpop.f32.mrb[21].mxu1  ;;  %v2375_v32 = vadd.f32 %v4572_v24, %v5235_v46 }
 0x11e   : > { %v2966_v28 = vadd.f32 %v2965_v20, %v2710_v21  ;;  %v4424_v29 = vpop.f32.mrb[28].mxu0  ;;  %v2858_v17 = vmax.f32 %v2354_v7, 0.0  ;;  %v2367_v30 = vadd.f32 %v5235_v46, %v2366_v26  ;;  %v4573_v31 = vpop.f32.mrb[22].mxu1  ;;  %v4846_v26 = vld [vmem:[%s5806_s3 + $0x34] ss:$12 sps:$4 sm:$0xff]  }
 0x11f   : > { %v1774_v34 = vpop.f32.mrb[29].mxu0  ;;  %v1783_v43 = vadd.f32 %v4424_v29, %v5235_v46  ;;  %v3138_v16 = vadd.f32 %v3137_v6, %v2857_v5  ;;  %v2378_v41 = vadd.f32 %v4573_v31, %v5235_v46  ;;  %v2863_v53 = vmax.f32 %v2375_v32, 0.0  ;;  %3449 = vmatprep.subr.bf16.mxu1 %v4846_v26 }
 0x120   : > { %v2967_v37 = vadd.f32 %v2966_v28, %v2711_v25  ;;  %v1775_v38 = vadd.f32 %v5235_v46, %v1774_v34  ;;  %v4425_v39 = vpop.f32.mrb[30].mxu0 }
 0x121   : > { %v1777_v44 = vpop.f32.mrb[31].mxu0  ;;  %v1786_v54 = vadd.f32 %v4425_v39, %v5235_v46  ;;  %v2715_v0 = vmax.f32 %v1783_v43, 0.0  ;;  %v3139_v23 = vadd.f32 %v3138_v16, %v2858_v17  ;;  %v2864_v63 = vmax.f32 %v2378_v41, 0.0  ;;  %v4833_v16 = vld [vmem:[%s5024_s13 + $0x258] sm:$0xff]   ;;  %v4836_v17 = vld [vmem:[%s5024_s13 + $0x260] sm:$0xff]  }
 0x122   : > { %v2713_v47 = vmax.f32 %v1775_v38, 0.0  ;;  %v2968_v48 = vadd.f32 %v2967_v37, %v2712_v33  ;;  %v1778_v49 = vadd.f32 %v5235_v46, %v1777_v44  ;;  %v2369_v33 = vpop.f32.mrb[23].mxu1  ;;  %v2861_v37 = vmax.f32 %v2367_v30, 0.0 }
 0x123   : > { %4531 = vmatmul.mubr.msk.bf16.gmra.mrb[136].mxu0 %vm1236_vm2, %v4821_v35  ;;  %v2716_v8 = vmax.f32 %v1786_v54, 0.0  ;;  %v3140_v29 = vadd.f32 %v3139_v23, %v2859_v11  ;;  %v2370_v42 = vadd.f32 %v5235_v46, %v2369_v33  ;;  %v4576_v61 = vpop.f32.mrb[24].mxu1 }
 0x124   : > { %v2969_v59 = vadd.f32 %v2968_v48, %v2713_v47  ;;  %v2714_v60 = vmax.f32 %v1778_v49, 0.0  ;;  %4534 = vmatprep.mubr.msk.bf16.mxu0 %vm1236_vm2, %v4824_v40  ;;  %v4829_v40 = vld [vmem:[%s5024_s13 + $0x248] sm:$0xff]   ;;  %v4832_v48 = vld [vmem:[%s5024_s13 + $0x250] sm:$0xff]   ;;  %v2382_v1 = vpop.f32.mrb[25].mxu1  ;;  %v2391_v7 = vadd.f32 %v4576_v61, %v5235_v46 }
 0x125   : > { %v3141_v38 = vadd.f32 %v3140_v29, %v2860_v22  ;;  %v2862_v54 = vmax.f32 %v2370_v42, 0.0  ;;  %v4577_v5 = vpop.f32.mrb[26].mxu1 }
 0x126   : > { %v2970_v3 = vadd.f32 %v2969_v59, %v2714_v60  ;;  %v4428_v4 = vpop.f32.mrb[32].mxu0 }
 0x127   : > { %v1790_v9 = vpop.f32.mrb[33].mxu0  ;;  %v1799_v18 = vadd.f32 %v4428_v4, %v5235_v46  ;;  %v3142_v49 = vadd.f32 %v3141_v38, %v2861_v37  ;;  %v2383_v4 = vadd.f32 %v5235_v46, %v2382_v1 }
 0x128   : > { %v2971_v12 = vadd.f32 %v2970_v3, %v2715_v0  ;;  %v1791_v13 = vadd.f32 %v5235_v46, %v1790_v9  ;;  %v4429_v14 = vpop.f32.mrb[34].mxu0 }
 0x129   : > { %v1793_v19 = vpop.f32.mrb[35].mxu0  ;;  %v1802_v25 = vadd.f32 %v4429_v14, %v5235_v46  ;;  %v2719_v34 = vmax.f32 %v1799_v18, 0.0  ;;  %v3143_v0 = vadd.f32 %v3142_v49, %v2862_v54 }
 0x12a   : > { %v5345_v20 = vadd.f32 %v2971_v12, %v2716_v8  ;;  %v1794_v21 = vadd.f32 %v5235_v46, %v1793_v19  ;;  %v2717_v27 = vmax.f32 %v1791_v13, 0.0  ;;  %v2385_v8 = vpop.f32.mrb[27].mxu1  ;;  %v2865_v12 = vmax.f32 %v2383_v4, 0.0 }
 0x12b   : > { %4535 = vmatmul.mubr.msk.bf16.gmra.mrb[140].mxu0 %vm1236_vm2, %v4825_v10  ;;  %v2720_v43 = vmax.f32 %v1802_v25, 0.0  ;;  %v3144_v6 = vadd.f32 %v3143_v0, %v2863_v53  ;;  %v2386_v13 = vadd.f32 %v5235_v46, %v2385_v8  ;;  %v2394_v19 = vadd.f32 %v4577_v5, %v5235_v46  ;;  %v4844_v25 = vld [vmem:[%s5806_s3 + $0x30] ss:$12 sps:$4 sm:$0xff]  }
 0x12c   : > { %v2718_v28 = vmax.f32 %v1794_v21, 0.0  ;;  %4538 = vmatprep.mubr.msk.bf16.mxu0 %vm1236_vm2, %v4828_v15  ;;  %3450 = vmatpush1.bf16.msra.mxu1 %v4844_v25 }
 0x12d   : > { %v3145_v18 = vadd.f32 %v3144_v6, %v2864_v63  ;;  %v2866_v24 = vmax.f32 %v2386_v13, 0.0 }
 0x12e   : > { %v2979_v35 = vadd.f32 %v2718_v28, %v2717_v27  ;;  %v4432_v36 = vpop.f32.mrb[36].mxu0  ;;  %v2867_v28 = vmax.f32 %v2391_v7, 0.0 }
 0x12f   : > { %v1806_v39 = vpop.f32.mrb[37].mxu0  ;;  %v1815_v57 = vadd.f32 %v4432_v36, %v5235_v46  ;;  %v3146_v29 = vadd.f32 %v3145_v18, %v2865_v12  ;;  %v4849_v18 = vld [vmem:[%s5806_s3 + $0x4c] ss:$12 sps:$4 sm:$0xff]  }
 0x130   : > { %v2980_v44 = vadd.f32 %v2979_v35, %v2719_v34  ;;  %v1807_v45 = vadd.f32 %v5235_v46, %v1806_v39  ;;  %v4433_v47 = vpop.f32.mrb[38].mxu0  ;;  %v4580_v34 = vpop.f32.mrb[28].mxu1  ;;  %v2868_v35 = vmax.f32 %v2394_v19, 0.0  ;;  %3451 = vmatprep.subr.bf16.mxu1 %v4849_v18 }
 0x131   : > { %v1809_v52 = vpop.f32.mrb[39].mxu0  ;;  %v1818_v62 = vadd.f32 %v4433_v47, %v5235_v46  ;;  %v2723_v9 = vmax.f32 %v1815_v57, 0.0  ;;  %v3147_v36 = vadd.f32 %v3146_v29, %v2866_v24  ;;  %v2398_v37 = vpop.f32.mrb[29].mxu1  ;;  %v4837_v57 = vld [vmem:[%s5024_s13 + $0x268] sm:$0xff]  }
 0x132   : > { %v2721_v58 = vmax.f32 %v1807_v45, 0.0  ;;  %v2981_v59 = vadd.f32 %v2980_v44, %v2720_v43  ;;  %v1810_v60 = vadd.f32 %v5235_v46, %v1809_v52  ;;  %v2399_v41 = vadd.f32 %v5235_v46, %v2398_v37  ;;  %v4581_v42 = vpop.f32.mrb[30].mxu1 }
 0x133   : > { %4539 = vmatmul.mubr.msk.bf16.gmra.mrb[144].mxu0 %vm1236_vm2, %v4829_v40  ;;  %v2724_v14 = vmax.f32 %v1818_v62, 0.0  ;;  %v3148_v43 = vadd.f32 %v3147_v36, %v2867_v28  ;;  %v2407_v44 = vadd.f32 %v4580_v34, %v5235_v46  ;;  %v2401_v45 = vpop.f32.mrb[31].mxu1 }
 0x134   : > { %v2982_v2 = vadd.f32 %v2981_v59, %v2721_v58  ;;  %v2722_v3 = vmax.f32 %v1810_v60, 0.0  ;;  %4542 = vmatprep.mubr.msk.bf16.mxu0 %vm1236_vm2, %v4832_v48  ;;  %v2869_v52 = vmax.f32 %v2399_v41, 0.0  ;;  %v2402_v53 = vadd.f32 %v5235_v46, %v2401_v45  ;;  %v4584_v8 = vpop.f32.mrb[32].mxu1 }
 0x135   : > { %v3149_v58 = vadd.f32 %v3148_v43, %v2868_v35  ;;  %v2410_v59 = vadd.f32 %v4581_v42, %v5235_v46 }
 0x136   : > { %v2983_v10 = vadd.f32 %v2982_v2, %v2722_v3  ;;  %v4436_v11 = vpop.f32.mrb[40].mxu0  ;;  %v2870_v0 = vmax.f32 %v2402_v53, 0.0  ;;  %v2871_v2 = vmax.f32 %v2407_v44, 0.0 }
 0x137   : > { %v1822_v15 = vpop.f32.mrb[41].mxu0  ;;  %v1831_v30 = vadd.f32 %v4436_v11, %v5235_v46  ;;  %v3150_v3 = vadd.f32 %v3149_v58, %v2869_v52  ;;  %v2414_v11 = vpop.f32.mrb[33].mxu1 }
 0x138   : > { %v2984_v21 = vadd.f32 %v2983_v10, %v2723_v9  ;;  %v1823_v22 = vadd.f32 %v5235_v46, %v1822_v15  ;;  %v4437_v23 = vpop.f32.mrb[42].mxu0  ;;  %v2872_v9 = vmax.f32 %v2410_v59, 0.0  ;;  %v2415_v15 = vadd.f32 %v5235_v46, %v2414_v11 }
 0x139   : > { %v1825_v27 = vpop.f32.mrb[43].mxu0  ;;  %v1834_v39 = vadd.f32 %v4437_v23, %v5235_v46  ;;  %v2727_v47 = vmax.f32 %v1831_v30, 0.0  ;;  %v3151_v10 = vadd.f32 %v3150_v3, %v2870_v0 }
 0x13a   : > { %v2725_v31 = vmax.f32 %v1823_v22, 0.0  ;;  %v2985_v32 = vadd.f32 %v2984_v21, %v2724_v14  ;;  %v1826_v33 = vadd.f32 %v5235_v46, %v1825_v27  ;;  %v2423_v21 = vadd.f32 %v4584_v8, %v5235_v46 }
 0x13b   : > { %4543 = vmatmul.mubr.msk.bf16.gmra.mrb[148].mxu0 %vm1236_vm2, %v4833_v16  ;;  %v2728_v60 = vmax.f32 %v1834_v39, 0.0  ;;  %v4585_v16 = vpop.f32.mrb[34].mxu1  ;;  %v3152_v19 = vadd.f32 %v3151_v10, %v2871_v2  ;;  %v2873_v26 = vmax.f32 %v2415_v15, 0.0 }
 0x13c   : > { %v2986_v38 = vadd.f32 %v2985_v32, %v2725_v31  ;;  %v2726_v40 = vmax.f32 %v1826_v33, 0.0  ;;  %4546 = vmatprep.mubr.msk.bf16.mxu0 %vm1236_vm2, %v4836_v17  ;;  %v4847_v17 = vld [vmem:[%s5806_s3 + $0x48] ss:$12 sps:$4 sm:$0xff]   ;;  %v2417_v22 = vpop.f32.mrb[35].mxu1  ;;  %v2426_v30 = vadd.f32 %v4585_v16, %v5235_v46  ;;  %v2875_v37 = vmax.f32 %v2423_v21, 0.0 }
 0x13d   : > { %v2418_v27 = vadd.f32 %v5235_v46, %v2417_v22  ;;  %v3153_v29 = vadd.f32 %v3152_v19, %v2872_v9  ;;  %3452 = vmatpush1.bf16.msra.mxu1 %v4847_v17  ;;  %v4588_v43 = vpop.f32.mrb[36].mxu1 }
 0x13e   : > { %v2987_v48 = vadd.f32 %v2986_v38, %v2726_v40  ;;  %v4440_v49 = vpop.f32.mrb[44].mxu0  ;;  %v2876_v45 = vmax.f32 %v2426_v30, 0.0  ;;  %v2439_v53 = vadd.f32 %v4588_v43, %v5235_v46 }
 0x13f   : > { %v1838_v54 = vpop.f32.mrb[45].mxu0  ;;  %v1847_v4 = vadd.f32 %v4440_v49, %v5235_v46  ;;  %v2874_v35 = vmax.f32 %v2418_v27, 0.0  ;;  %v3154_v38 = vadd.f32 %v3153_v29, %v2873_v26 }
 0x140   : > { %v2988_v61 = vadd.f32 %v2987_v48, %v2727_v47  ;;  %v1839_v62 = vadd.f32 %v5235_v46, %v1838_v54  ;;  %v4441_v63 = vpop.f32.mrb[46].mxu0  ;;  %v2430_v48 = vpop.f32.mrb[37].mxu1  ;;  %v2879_v8 = vmax.f32 %v2439_v53, 0.0 }
 0x141   : > { %v1841_v1 = vpop.f32.mrb[47].mxu0  ;;  %v1850_v13 = vadd.f32 %v4441_v63, %v5235_v46  ;;  %v2731_v23 = vmax.f32 %v1847_v4, 0.0  ;;  %v3155_v47 = vadd.f32 %v3154_v38, %v2874_v35  ;;  %v2431_v54 = vadd.f32 %v5235_v46, %v2430_v48 }
 0x142   : > { %v2729_v5 = vmax.f32 %v1839_v62, 0.0  ;;  %v2989_v6 = vadd.f32 %v2988_v61, %v2728_v60  ;;  %v1842_v7 = vadd.f32 %v5235_v46, %v1841_v1 }
 0x143   : > { %4547 = vmatmul.mubr.msk.bf16.gmra.mrb[152].mxu0 %vm1236_vm2, %v4837_v57  ;;  %v2732_v31 = vmax.f32 %v1850_v13, 0.0  ;;  %v4589_v57 = vpop.f32.mrb[38].mxu1  ;;  %v3156_v58 = vadd.f32 %v3155_v47, %v2875_v37  ;;  %v2877_v0 = vmax.f32 %v2431_v54, 0.0 }
 0x144   : > { %v2990_v12 = vadd.f32 %v2989_v6, %v2729_v5  ;;  %v2730_v14 = vmax.f32 %v1842_v7, 0.0  ;;  %v2442_v59 = vadd.f32 %v4589_v57, %v5235_v46  ;;  %v2433_v60 = vpop.f32.mrb[39].mxu1 }
 0x145   : > { %v2434_v1 = vadd.f32 %v5235_v46, %v2433_v60  ;;  %v5409_v4 = vadd.f32 %v3156_v58, %v2876_v45  ;;  %v4592_v17 = vpop.f32.mrb[40].mxu1 }
 0x146   : > { %v2991_v24 = vadd.f32 %v2990_v12, %v2730_v14  ;;  %v4444_v25 = vpop.f32.mrb[48].mxu0  ;;  %v2880_v12 = vmax.f32 %v2442_v59, 0.0  ;;  %v2455_v19 = vadd.f32 %v4592_v17, %v5235_v46  ;;  %v2446_v21 = vpop.f32.mrb[41].mxu1  ;;  %v4850_v17 = vld [vmem:[%s5806_s3 + $0x60] ss:$12 sps:$4 sm:$0xff]  }
 0x147   : > { %v1854_v28 = vpop.f32.mrb[49].mxu0  ;;  %v1863_v39 = vadd.f32 %v4444_v25, %v5235_v46  ;;  %v2878_v9 = vmax.f32 %v2434_v1, 0.0  ;;  %v2447_v25 = vadd.f32 %v5235_v46, %v2446_v21  ;;  %v4593_v26 = vpop.f32.mrb[42].mxu1 }
 0x148   : > { %v2992_v32 = vadd.f32 %v2991_v24, %v2731_v23  ;;  %v1855_v33 = vadd.f32 %v5235_v46, %v1854_v28  ;;  %v4445_v34 = vpop.f32.mrb[50].mxu0  ;;  %v2458_v28 = vadd.f32 %v4593_v26, %v5235_v46  ;;  %v2449_v29 = vpop.f32.mrb[43].mxu1  ;;  %v2883_v37 = vmax.f32 %v2455_v19, 0.0 }
 0x149   : > { %v1857_v36 = vpop.f32.mrb[51].mxu0  ;;  %v1866_v44 = vadd.f32 %v4445_v34, %v5235_v46  ;;  %v2735_v61 = vmax.f32 %v1863_v39, 0.0  ;;  %v3164_v16 = vadd.f32 %v2878_v9, %v2877_v0  ;;  %v2450_v34 = vadd.f32 %v5235_v46, %v2449_v29  ;;  %v4596_v53 = vpop.f32.mrb[44].mxu1 }
 0x14a   : > { %v2733_v40 = vmax.f32 %v1855_v33, 0.0  ;;  %v2993_v41 = vadd.f32 %v2992_v32, %v2732_v31  ;;  %v1858_v42 = vadd.f32 %v5235_v46, %v1857_v36  ;;  %v2881_v32 = vmax.f32 %v2447_v25, 0.0  ;;  %v2462_v58 = vpop.f32.mrb[45].mxu1 }
 0x14b   : > { %v2736_v2 = vmax.f32 %v1866_v44, 0.0  ;;  %v3165_v24 = vadd.f32 %v3164_v16, %v2879_v8  ;;  %v2884_v45 = vmax.f32 %v2458_v28, 0.0  ;;  %v2471_v57 = vadd.f32 %v4596_v53, %v5235_v46  ;;  %v5446_v53 = vld [vmem:[%s5805_s2] ss:$0 sm:$0xff] }
 0x14c   : > { %v2994_v49 = vadd.f32 %v2993_v41, %v2733_v40  ;;  %v2734_v52 = vmax.f32 %v1858_v42, 0.0  ;;  %v2882_v42 = vmax.f32 %v2450_v34, 0.0  ;;  %v2973_v19 = vrot.slane %v5345_v20, 4 }
 0x14d   : > { %v3166_v33 = vadd.f32 %v3165_v24, %v2880_v12 }
 0x14e   : > { %v2995_v62 = vadd.f32 %v2994_v49, %v2734_v52  ;;  %v4448_v63 = vpop.f32.mrb[52].mxu0 }
 0x14f   : > { %v1870_v3 = vpop.f32.mrb[53].mxu0  ;;  %v1879_v10 = vadd.f32 %v4448_v63, %v5235_v46  ;;  %v3167_v41 = vadd.f32 %v3166_v33, %v2881_v32  ;;  %v4597_v63 = vpop.f32.mrb[46].mxu1 }
 0x150   : > { %v2996_v5 = vadd.f32 %v2995_v62, %v2735_v61  ;;  %v1871_v6 = vadd.f32 %v5235_v46, %v1870_v3  ;;  %v4449_v7 = vpop.f32.mrb[54].mxu0  ;;  %v2463_v62 = vadd.f32 %v5235_v46, %v2462_v58  ;;  %v2474_v1 = vadd.f32 %v4597_v63, %v5235_v46 }
 0x151   : > { %v1873_v11 = vpop.f32.mrb[55].mxu0  ;;  %v1882_v18 = vadd.f32 %v4449_v7, %v5235_v46  ;;  %v2739_v27 = vmax.f32 %v1879_v10, 0.0  ;;  %v3168_v52 = vadd.f32 %v3167_v41, %v2882_v42 }
 0x152   : > { %v2737_v13 = vmax.f32 %v1871_v6, 0.0  ;;  %v2997_v14 = vadd.f32 %v2996_v5, %v2736_v2  ;;  %v1874_v15 = vadd.f32 %v5235_v46, %v1873_v11  ;;  %v2465_v2 = vpop.f32.mrb[47].mxu1  ;;  %v2885_v6 = vmax.f32 %v2463_v62, 0.0 }
 0x153   : > { %v2740_v35 = vmax.f32 %v1882_v18, 0.0  ;;  %v3169_v61 = vadd.f32 %v3168_v52, %v2883_v37  ;;  %v2466_v8 = vadd.f32 %v5235_v46, %v2465_v2  ;;  %v2887_v11 = vmax.f32 %v2471_v57, 0.0  ;;  %v4852_v18 = vld [vmem:[%s5806_s3 + $0x64] ss:$12 sps:$4 sm:$0xff]   ;;  %v4600_v28 = vpop.f32.mrb[48].mxu1 }
 0x154   : > { %v2998_v22 = vadd.f32 %v2997_v14, %v2737_v13  ;;  %v2738_v23 = vmax.f32 %v1874_v15, 0.0  ;;  %3453 = vmatprep.subr.bf16.mxu1 %v4852_v18  ;;  %v2974_v37 = vadd.f32 %v2973_v19, %v5345_v20 }
 0x155   : > { %v3170_v7 = vadd.f32 %v3169_v61, %v2884_v45  ;;  %v2886_v16 = vmax.f32 %v2466_v8, 0.0  ;;  %3454 = vmatpush1.bf16.msra.mxu1 %v4850_v17 }
 0x156   : > { %v2999_v30 = vadd.f32 %v2998_v22, %v2738_v23  ;;  %v4452_v31 = vpop.f32.mrb[56].mxu0  ;;  %v2888_v23 = vmax.f32 %v2474_v1, 0.0 }
 0x157   : > { %v1886_v36 = vpop.f32.mrb[57].mxu0  ;;  %v1895_v43 = vadd.f32 %v4452_v31, %v5235_v46  ;;  %v3171_v15 = vadd.f32 %v3170_v7, %v2885_v6  ;;  %v2478_v31 = vpop.f32.mrb[49].mxu1 }
 0x158   : > { %v3000_v38 = vadd.f32 %v2999_v30, %v2739_v27  ;;  %v1887_v39 = vadd.f32 %v5235_v46, %v1886_v36  ;;  %v4453_v40 = vpop.f32.mrb[58].mxu0  ;;  %v2487_v30 = vadd.f32 %v4600_v28, %v5235_v46  ;;  %v4601_v36 = vpop.f32.mrb[50].mxu1 }
 0x159   : > { %v1889_v44 = vpop.f32.mrb[59].mxu0  ;;  %v1898_v54 = vadd.f32 %v4453_v40, %v5235_v46  ;;  %v2743_v0 = vmax.f32 %v1895_v43, 0.0  ;;  %v3172_v27 = vadd.f32 %v3171_v15, %v2886_v16  ;;  %v2481_v40 = vpop.f32.mrb[51].mxu1 }
 0x15a   : > { %v2741_v47 = vmax.f32 %v1887_v39, 0.0  ;;  %v3001_v48 = vadd.f32 %v3000_v38, %v2740_v35  ;;  %v1890_v49 = vadd.f32 %v5235_v46, %v1889_v44  ;;  %v2479_v35 = vadd.f32 %v5235_v46, %v2478_v31  ;;  %v4604_v1 = vpop.f32.mrb[52].mxu1 }
 0x15b   : > { %v2744_v9 = vmax.f32 %v1898_v54, 0.0  ;;  %v3173_v34 = vadd.f32 %v3172_v27, %v2887_v11  ;;  %v2490_v39 = vadd.f32 %v4601_v36, %v5235_v46  ;;  %v2482_v45 = vadd.f32 %v5235_v46, %v2481_v40 }
 0x15c   : > { %v3002_v59 = vadd.f32 %v3001_v48, %v2741_v47  ;;  %v2742_v60 = vmax.f32 %v1890_v49, 0.0  ;;  %v2889_v43 = vmax.f32 %v2479_v35, 0.0  ;;  %v2891_v49 = vmax.f32 %v2487_v30, 0.0 }
 0x15d   : > { %v3174_v44 = vadd.f32 %v3173_v34, %v2888_v23  ;;  %v2890_v58 = vmax.f32 %v2482_v45, 0.0  ;;  %v2892_v63 = vmax.f32 %v2490_v39, 0.0 }
 0x15e   : > { %v3003_v3 = vadd.f32 %v3002_v59, %v2742_v60  ;;  %v4456_v5 = vpop.f32.mrb[60].mxu0  ;;  %v2975_v59 = vrot.slane %v2974_v37, 2 }
 0x15f   : > { %v1902_v10 = vpop.f32.mrb[61].mxu0  ;;  %v1911_v21 = vadd.f32 %v4456_v5, %v5235_v46  ;;  %v3175_v57 = vadd.f32 %v3174_v44, %v2889_v43  ;;  %v2494_v5 = vpop.f32.mrb[53].mxu1 }
 0x160   : > { %v3004_v12 = vadd.f32 %v3003_v3, %v2743_v0  ;;  %v1903_v13 = vadd.f32 %v5235_v46, %v1902_v10  ;;  %v4457_v14 = vpop.f32.mrb[62].mxu0  ;;  %v4605_v10 = vpop.f32.mrb[54].mxu1  ;;  %v2976_v11 = vadd.f32 %v2975_v59, %v2974_v37 }
 0x161   : > { %v1905_v22 = vpop.f32.mrb[63].mxu0  ;;  %v1914_v29 = vadd.f32 %v4457_v14, %v5235_v46  ;;  %v2747_v38 = vmax.f32 %v1911_v21, 0.0  ;;  %v3176_v0 = vadd.f32 %v3175_v57, %v2890_v58  ;;  %v2497_v14 = vpop.f32.mrb[55].mxu1  ;;  %v2506_v23 = vadd.f32 %v5446_v53, %v4605_v10  ;;  %v4855_v10 = vld [vmem:[%s5806_s3 + $0x7c] ss:$12 sps:$4 sm:$0xff]  }
 0x162   : > { %v2745_v24 = vmax.f32 %v1903_v13, 0.0  ;;  %v3005_v25 = vadd.f32 %v3004_v12, %v2744_v9  ;;  %v1906_v26 = vadd.f32 %v5235_v46, %v1905_v22  ;;  %v2495_v9 = vadd.f32 %v5446_v53, %v2494_v5  ;;  %v4608_v39 = vpop.f32.mrb[56].mxu1  ;;  %3455 = vmatprep.subr.bf16.mxu1 %v4855_v10 }
 0x163   : > { %v2748_v47 = vmax.f32 %v1914_v29, 0.0  ;;  %v3177_v8 = vadd.f32 %v3176_v0, %v2891_v49  ;;  %v2503_v13 = vadd.f32 %v5446_v53, %v4604_v1  ;;  %v2977_v30 = vrot.slane %v2976_v11, 1  ;;  %v2510_v43 = vpop.f32.mrb[57].mxu1 }
 0x164   : > { %v3006_v32 = vadd.f32 %v3005_v25, %v2745_v24  ;;  %v2746_v33 = vmax.f32 %v1906_v26, 0.0  ;;  %v2893_v18 = vmax.f32 %v2495_v9, 0.0  ;;  %v2498_v24 = vadd.f32 %v5446_v53, %v2497_v14  ;;  %v4609_v49 = vpop.f32.mrb[58].mxu1  ;;  %v4853_v9 = vld [vmem:[%s5806_s3 + $0x78] ss:$12 sps:$4 sm:$0xff]  }
 0x165   : > { %v3178_v19 = vadd.f32 %v3177_v8, %v2892_v63  ;;  %v2519_v57 = vadd.f32 %v5446_v53, %v4608_v39  ;;  %v2513_v58 = vpop.f32.mrb[59].mxu1  ;;  %3456 = vmatpush1.bf16.msra.mxu1 %v4853_v9 }
 0x166   : > { %v3007_v41 = vadd.f32 %v3006_v32, %v2746_v33  ;;  %v4460_v42 = vpop.f32.mrb[64].mxu0  ;;  %v2895_v33 = vmax.f32 %v2503_v13, 0.0  ;;  %v2894_v34 = vmax.f32 %v2498_v24, 0.0 }
 0x167   : > { %v1918_v48 = vpop.f32.mrb[65].mxu0  ;;  %v1927_v60 = vadd.f32 %v5446_v53, %v4460_v42  ;;  %v3179_v29 = vadd.f32 %v3178_v19, %v2893_v18  ;;  %v4612_v18 = vpop.f32.mrb[60].mxu1 }
 0x168   : > { %v3008_v52 = vadd.f32 %v3007_v41, %v2747_v38  ;;  %v1919_v20 = vadd.f32 %v5446_v53, %v1918_v48  ;;  %v4461_v54 = vpop.f32.mrb[66].mxu0  ;;  %v2896_v41 = vmax.f32 %v2506_v23, 0.0  ;;  %v2511_v48 = vadd.f32 %v5446_v53, %v2510_v43 }
 0x169   : > { %v1921_v61 = vpop.f32.mrb[67].mxu0  ;;  %v1930_v3 = vadd.f32 %v5446_v53, %v4461_v54  ;;  %v2751_v12 = vmax.f32 %v1927_v60, 0.0  ;;  %v3180_v42 = vadd.f32 %v3179_v29, %v2894_v34  ;;  %v2535_v29 = vadd.f32 %v5446_v53, %v4612_v18 }
 0x16a   : > { %v3009_v62 = vadd.f32 %v3008_v52, %v2748_v47  ;;  %v1922_v46 = vadd.f32 %v5446_v53, %v1921_v61  ;;  %v2749_v2 = vmax.f32 %v1919_v20, 0.0  ;;  %v2978_v52 = vadd.f32 %v2977_v30, %v2976_v11 }
 0x16b   : > { %v2752_v21 = vmax.f32 %v1930_v3, 0.0  ;;  %v3181_v54 = vadd.f32 %v3180_v42, %v2895_v33 }
 0x16c   : > { %v3010_v6 = vrot.slane %v3009_v62, 4  ;;  %v2750_v7 = vmax.f32 %v1922_v46, 0.0  ;;  %v2514_v46 = vadd.f32 %v5446_v53, %v2513_v58 }
 0x16d   : > { %v3182_v1 = vadd.f32 %v3181_v54, %v2896_v41 }
 0x16e   : > { %v3011_v15 = vadd.f32 %v3010_v6, %v3009_v62  ;;  %v3016_v16 = vadd.f32 %v2750_v7, %v2749_v2  ;;  %v4464_v17 = vpop.f32.mrb[68].mxu0  ;;  %v2897_v62 = vmax.f32 %v2511_v48, 0.0  ;;  %v2522_v2 = vadd.f32 %v5446_v53, %v4609_v49 }
 0x16f   : > { %v1934_v22 = vpop.f32.mrb[69].mxu0  ;;  %v1943_v31 = vadd.f32 %v5446_v53, %v4464_v17  ;;  %v2898_v8 = vmax.f32 %v2514_v46, 0.0 }
 0x170   : > { %v3012_v25 = vrot.slane %v3011_v15, 2  ;;  %v3017_v26 = vadd.f32 %v3016_v16, %v2751_v12  ;;  %v1935_v27 = vadd.f32 %v5446_v53, %v1934_v22  ;;  %v4465_v28 = vpop.f32.mrb[70].mxu0  ;;  %v2899_v12 = vmax.f32 %v2519_v57, 0.0  ;;  %v2526_v22 = vpop.f32.mrb[61].mxu1 }
 0x171   : > { %v1937_v32 = vpop.f32.mrb[71].mxu0  ;;  %v1946_v40 = vadd.f32 %v5446_v53, %v4465_v28  ;;  %v2755_v20 = vmax.f32 %v1943_v31, 0.0  ;;  %v3183_v13 = vadd.f32 %v3182_v1, %v2897_v62  ;;  %v2900_v19 = vmax.f32 %v2522_v2, 0.0 }
 0x172   : > { %v3013_v35 = vadd.f32 %v3012_v25, %v3011_v15  ;;  %v2753_v36 = vmax.f32 %v1935_v27, 0.0  ;;  %v3018_v37 = vadd.f32 %v3017_v26, %v2752_v21  ;;  %v1938_v38 = vadd.f32 %v5446_v53, %v1937_v32  ;;  %v4613_v27 = vpop.f32.mrb[62].mxu1 }
 0x173   : > { %v2756_v63 = vmax.f32 %v1946_v40, 0.0  ;;  %v3184_v21 = vadd.f32 %v3183_v13, %v2898_v8  ;;  %v2527_v26 = vadd.f32 %v5446_v53, %v2526_v22  ;;  %v2529_v30 = vpop.f32.mrb[63].mxu1 }
 0x174   : > { %v3014_v44 = vrot.slane %v3013_v35, 1  ;;  %v3019_v45 = vadd.f32 %v3018_v37, %v2753_v36  ;;  %v2754_v47 = vmax.f32 %v1938_v38, 0.0  ;;  %v2538_v38 = vadd.f32 %v5446_v53, %v4613_v27  ;;  %v4616_v54 = vpop.f32.mrb[64].mxu1 }
 0x175   : > { %v3185_v28 = vadd.f32 %v3184_v21, %v2899_v12  ;;  %v2901_v34 = vmax.f32 %v2527_v26, 0.0  ;;  %v2551_v1 = vadd.f32 %v5446_v53, %v4616_v54 }
 0x176   : > { %v3015_v59 = vadd.f32 %v3014_v44, %v3013_v35  ;;  %v3020_v60 = vadd.f32 %v3019_v45, %v2754_v47  ;;  %v4468_v61 = vpop.f32.mrb[72].mxu0  ;;  %v2530_v35 = vadd.f32 %v5446_v53, %v2529_v30  ;;  %v2903_v45 = vmax.f32 %v2535_v29, 0.0 }
 0x177   : > { %v1950_v0 = vpop.f32.mrb[73].mxu0  ;;  %v1959_v14 = vadd.f32 %v5446_v53, %v4468_v61  ;;  %v3186_v37 = vadd.f32 %v3185_v28, %v2900_v19  ;;  %v2904_v57 = vmax.f32 %v2538_v38, 0.0  ;;  %v2907_v19 = vmax.f32 %v2551_v1, 0.0 }
 0x178   : > { %v5465_v3 = vsel %vm3246_vm3, %v3015_v59, %v2978_v52  ;;  %v3021_v5 = vadd.f32 %v3020_v60, %v2755_v20  ;;  %v1951_v6 = vadd.f32 %v5446_v53, %v1950_v0  ;;  %v4469_v7 = vpop.f32.mrb[74].mxu0  ;;  %v2902_v43 = vmax.f32 %v2530_v35, 0.0  ;;  %v2542_v59 = vpop.f32.mrb[65].mxu1 }
 0x179   : > { %v1953_v11 = vpop.f32.mrb[75].mxu0  ;;  %v1962_v24 = vadd.f32 %v5446_v53, %v4469_v7  ;;  %v2759_v31 = vmax.f32 %v1959_v14, 0.0  ;;  %v3187_v47 = vadd.f32 %v3186_v37, %v2901_v34  ;;  %v2543_v46 = vadd.f32 %v5446_v53, %v2542_v59 }
 0x17a   : > { %v2757_v15 = vmax.f32 %v1951_v6, 0.0  ;;  %v3022_v16 = vadd.f32 %v3021_v5, %v2756_v63  ;;  %v1954_v17 = vadd.f32 %v5446_v53, %v1953_v11  ;;  %v4617_v63 = vpop.f32.mrb[66].mxu1 }
 0x17b   : > { %v2760_v39 = vmax.f32 %v1962_v24, 0.0  ;;  %v3188_v58 = vadd.f32 %v3187_v47, %v2902_v43  ;;  %v2545_v2 = vpop.f32.mrb[67].mxu1  ;;  %v2905_v8 = vmax.f32 %v2543_v46, 0.0  ;;  %v2554_v12 = vadd.f32 %v5446_v53, %v4617_v63 }
 0x17c   : > { %v3023_v23 = vadd.f32 %v3022_v16, %v2757_v15  ;;  %v2758_v25 = vmax.f32 %v1954_v17, 0.0  ;;  %v2546_v9 = vadd.f32 %v5446_v53, %v2545_v2  ;;  %v4620_v26 = vpop.f32.mrb[68].mxu1 }
 0x17d   : > { %v3189_v0 = vadd.f32 %v3188_v58, %v2903_v45  ;;  %v2908_v28 = vmax.f32 %v2554_v12, 0.0  ;;  %v2567_v30 = vadd.f32 %v5446_v53, %v4620_v26  ;;  %v4858_v58 = vld [vmem:[%s5806_s3 + $0x94] ss:$12 sps:$4 sm:$0xff]  }
 0x17e   : > { %v3024_v32 = vadd.f32 %v3023_v23, %v2758_v25  ;;  %v4472_v33 = vpop.f32.mrb[76].mxu0  ;;  %v2906_v17 = vmax.f32 %v2546_v9, 0.0  ;;  %3457 = vmatprep.subr.bf16.mxu1 %v4858_v58 }
 0x17f   : > { %v1966_v36 = vpop.f32.mrb[77].mxu0  ;;  %v1975_v48 = vadd.f32 %v5446_v53, %v4472_v33  ;;  %v3190_v11 = vadd.f32 %v3189_v0, %v2904_v57  ;;  %v4856_v57 = vld [vmem:[%s5806_s3 + $0x90] ss:$12 sps:$4 sm:$0xff]  }
 0x180   : > { %v3025_v40 = vadd.f32 %v3024_v32, %v2759_v31  ;;  %v1967_v41 = vadd.f32 %v5446_v53, %v1966_v36  ;;  %v4473_v42 = vpop.f32.mrb[78].mxu0  ;;  %v2558_v31 = vpop.f32.mrb[69].mxu1  ;;  %3458 = vmatpush1.bf16.msra.mxu1 %v4856_v57 }
 0x181   : > { %v1969_v44 = vpop.f32.mrb[79].mxu0  ;;  %v1978_v61 = vadd.f32 %v5446_v53, %v4473_v42  ;;  %v2763_v5 = vmax.f32 %v1975_v48, 0.0  ;;  %v3191_v21 = vadd.f32 %v3190_v11, %v2905_v8  ;;  %v2559_v34 = vadd.f32 %v5446_v53, %v2558_v31  ;;  %v4621_v35 = vpop.f32.mrb[70].mxu1 }
 0x182   : > { %v2761_v49 = vmax.f32 %v1967_v41, 0.0  ;;  %v3026_v52 = vadd.f32 %v3025_v40, %v2760_v39  ;;  %v1970_v20 = vadd.f32 %v5446_v53, %v1969_v44  ;;  %v2570_v37 = vadd.f32 %v5446_v53, %v4621_v35  ;;  %v2561_v38 = vpop.f32.mrb[71].mxu1 }
 0x183   : > { %v2764_v13 = vmax.f32 %v1978_v61, 0.0  ;;  %v3192_v29 = vadd.f32 %v3191_v21, %v2906_v17  ;;  %v2909_v42 = vmax.f32 %v2559_v34, 0.0  ;;  %v2562_v43 = vadd.f32 %v5446_v53, %v2561_v38  ;;  %v4624_v1 = vpop.f32.mrb[72].mxu1 }
 0x184   : > { %v3027_v60 = vadd.f32 %v3026_v52, %v2761_v49  ;;  %v2762_v62 = vmax.f32 %v1970_v20, 0.0  ;;  %v2911_v48 = vmax.f32 %v2567_v30, 0.0  ;;  %v2912_v61 = vmax.f32 %v2570_v37, 0.0 }
 0x185   : > { %v3193_v36 = vadd.f32 %v3192_v29, %v2907_v19  ;;  %v2910_v54 = vmax.f32 %v2562_v43, 0.0 }
 0x186   : > { %v3028_v6 = vadd.f32 %v3027_v60, %v2762_v62  ;;  %v4476_v7 = vpop.f32.mrb[80].mxu0 }
 0x187   : > { %v1982_v10 = vpop.f32.mrb[81].mxu0  ;;  %v1991_v22 = vadd.f32 %v5446_v53, %v4476_v7  ;;  %v5497_v47 = vadd.f32 %v3193_v36, %v2908_v28  ;;  %v3201_v0 = vadd.f32 %v2910_v54, %v2909_v42 }
 0x188   : > { %v3029_v14 = vadd.f32 %v3028_v6, %v2763_v5  ;;  %v1983_v15 = vadd.f32 %v5446_v53, %v1982_v10  ;;  %v4477_v16 = vpop.f32.mrb[82].mxu0  ;;  %v2583_v5 = vadd.f32 %v5446_v53, %v4624_v1  ;;  %v2574_v6 = vpop.f32.mrb[73].mxu1 }
 0x189   : > { %v1985_v18 = vpop.f32.mrb[83].mxu0  ;;  %v1994_v27 = vadd.f32 %v5446_v53, %v4477_v16  ;;  %v2767_v39 = vmax.f32 %v1991_v22, 0.0  ;;  %v3202_v9 = vadd.f32 %v3201_v0, %v2911_v48  ;;  %v2575_v10 = vadd.f32 %v5446_v53, %v2574_v6  ;;  %v4625_v11 = vpop.f32.mrb[74].mxu1 }
 0x18a   : > { %v2765_v23 = vmax.f32 %v1983_v15, 0.0  ;;  %v3030_v24 = vadd.f32 %v3029_v14, %v2764_v13  ;;  %v1986_v25 = vadd.f32 %v5446_v53, %v1985_v18  ;;  %v2586_v13 = vadd.f32 %v5446_v53, %v4625_v11  ;;  %v2577_v14 = vpop.f32.mrb[75].mxu1 }
 0x18b   : > { %v2768_v44 = vmax.f32 %v1994_v27, 0.0  ;;  %v2913_v17 = vmax.f32 %v2575_v10, 0.0  ;;  %v3203_v18 = vadd.f32 %v3202_v9, %v2912_v61  ;;  %v2578_v19 = vadd.f32 %v5446_v53, %v2577_v14  ;;  %v4628_v36 = vpop.f32.mrb[76].mxu1 }
 0x18c   : > { %v3031_v32 = vadd.f32 %v3030_v24, %v2765_v23  ;;  %v2766_v33 = vmax.f32 %v1986_v25, 0.0  ;;  %v2915_v23 = vmax.f32 %v2583_v5, 0.0  ;;  %v2916_v31 = vmax.f32 %v2586_v13, 0.0 }
 0x18d   : > { %v3204_v27 = vadd.f32 %v3203_v18, %v2913_v17  ;;  %v2914_v28 = vmax.f32 %v2578_v19, 0.0  ;;  %v2599_v38 = vadd.f32 %v5446_v53, %v4628_v36 }
 0x18e   : > { %v3032_v40 = vadd.f32 %v3031_v32, %v2766_v33  ;;  %v4480_v41 = vpop.f32.mrb[84].mxu0 }
 0x18f   : > { %v1998_v45 = vpop.f32.mrb[85].mxu0  ;;  %v2007_v59 = vadd.f32 %v5446_v53, %v4480_v41  ;;  %v3205_v35 = vadd.f32 %v3204_v27, %v2914_v28  ;;  %v2919_v61 = vmax.f32 %v2599_v38, 0.0 }
 0x190   : > { %v3033_v49 = vadd.f32 %v3032_v40, %v2767_v39  ;;  %v1999_v52 = vadd.f32 %v5446_v53, %v1998_v45  ;;  %v4481_v20 = vpop.f32.mrb[86].mxu0  ;;  %v2590_v39 = vpop.f32.mrb[77].mxu1 }
 0x191   : > { %v2001_v60 = vpop.f32.mrb[87].mxu0  ;;  %v2010_v2 = vadd.f32 %v5446_v53, %v4481_v20  ;;  %v2771_v12 = vmax.f32 %v2007_v59, 0.0  ;;  %v3206_v42 = vadd.f32 %v3205_v35, %v2915_v23  ;;  %v2591_v43 = vadd.f32 %v5446_v53, %v2590_v39 }
 0x192   : > { %v2769_v62 = vmax.f32 %v1999_v52, 0.0  ;;  %v3034_v46 = vadd.f32 %v3033_v49, %v2768_v44  ;;  %v2002_v63 = vadd.f32 %v5446_v53, %v2001_v60  ;;  %v4629_v44 = vpop.f32.mrb[78].mxu1 }
 0x193   : > { %v2772_v21 = vmax.f32 %v2010_v2, 0.0  ;;  %v2602_v48 = vadd.f32 %v5446_v53, %v4629_v44  ;;  %v2593_v49 = vpop.f32.mrb[79].mxu1  ;;  %v2917_v54 = vmax.f32 %v2591_v43, 0.0  ;;  %v3207_v57 = vadd.f32 %v3206_v42, %v2916_v31 }
 0x194   : > { %v3035_v7 = vadd.f32 %v3034_v46, %v2769_v62  ;;  %v2770_v8 = vmax.f32 %v2002_v63, 0.0  ;;  %v2594_v58 = vadd.f32 %v5446_v53, %v2593_v49  ;;  %v4632_v11 = vpop.f32.mrb[80].mxu1 }
 0x195   : > { %v3208_v0 = vadd.f32 %v3207_v57, %v2917_v54  ;;  %v2920_v6 = vmax.f32 %v2602_v48, 0.0  ;;  %v2615_v13 = vadd.f32 %v5446_v53, %v4632_v11  ;;  %v2606_v14 = vpop.f32.mrb[81].mxu1 }
 0x196   : > { %v3036_v15 = vadd.f32 %v3035_v7, %v2770_v8  ;;  %v4484_v16 = vpop.f32.mrb[88].mxu0  ;;  %v2918_v1 = vmax.f32 %v2594_v58, 0.0  ;;  %v2607_v18 = vadd.f32 %v5446_v53, %v2606_v14  ;;  %v4633_v19 = vpop.f32.mrb[82].mxu1 }
 0x197   : > { %v2014_v22 = vpop.f32.mrb[89].mxu0  ;;  %v2023_v29 = vadd.f32 %v5446_v53, %v4484_v16  ;;  %v2609_v23 = vpop.f32.mrb[83].mxu1  ;;  %v2923_v31 = vmax.f32 %v2615_v13, 0.0 }
 0x198   : > { %v3037_v24 = vadd.f32 %v3036_v15, %v2771_v12  ;;  %v2015_v25 = vadd.f32 %v5446_v53, %v2014_v22  ;;  %v4485_v26 = vpop.f32.mrb[90].mxu0  ;;  %v3209_v10 = vadd.f32 %v3208_v0, %v2918_v1  ;;  %v2618_v22 = vadd.f32 %v5446_v53, %v4633_v19  ;;  %v4636_v43 = vpop.f32.mrb[84].mxu1 }
 0x199   : > { %v2017_v30 = vpop.f32.mrb[91].mxu0  ;;  %v2026_v37 = vadd.f32 %v5446_v53, %v4485_v26  ;;  %v2775_v45 = vmax.f32 %v2023_v29, 0.0  ;;  %v2921_v26 = vmax.f32 %v2607_v18, 0.0  ;;  %v2610_v28 = vadd.f32 %v5446_v53, %v2609_v23  ;;  %v2622_v48 = vpop.f32.mrb[85].mxu1 }
 0x19a   : > { %v2773_v32 = vmax.f32 %v2015_v25, 0.0  ;;  %v3038_v33 = vadd.f32 %v3037_v24, %v2772_v21  ;;  %v2018_v34 = vadd.f32 %v5446_v53, %v2017_v30  ;;  %v3210_v17 = vadd.f32 %v3209_v10, %v2919_v61  ;;  %v4637_v57 = vpop.f32.mrb[86].mxu1 }
 0x19b   : > { %v2776_v59 = vmax.f32 %v2026_v37, 0.0  ;;  %v2922_v36 = vmax.f32 %v2610_v28, 0.0  ;;  %v2623_v54 = vadd.f32 %v5446_v53, %v2622_v48 }
 0x19c   : > { %v3039_v40 = vadd.f32 %v3038_v33, %v2773_v32  ;;  %v2774_v41 = vmax.f32 %v2018_v34, 0.0  ;;  %v3211_v27 = vadd.f32 %v3210_v17, %v2920_v6 }
 0x19e   : > { %v3040_v52 = vadd.f32 %v3039_v40, %v2774_v41  ;;  %v4488_v20 = vpop.f32.mrb[92].mxu0  ;;  %v3212_v35 = vadd.f32 %v3211_v27, %v2921_v26  ;;  %v2924_v41 = vmax.f32 %v2618_v22, 0.0 }
 0x19f   : > { %v2030_v60 = vpop.f32.mrb[93].mxu0  ;;  %v2039_v2 = vadd.f32 %v5446_v53, %v4488_v20 }
 0x1a0   : > { %v3041_v62 = vadd.f32 %v3040_v52, %v2775_v45  ;;  %v2031_v46 = vadd.f32 %v5446_v53, %v2030_v60  ;;  %v4489_v63 = vpop.f32.mrb[94].mxu0  ;;  %v3213_v42 = vadd.f32 %v3212_v35, %v2922_v36  ;;  %v2625_v60 = vpop.f32.mrb[87].mxu1 }
 0x1a1   : > { %v2033_v5 = vpop.f32.mrb[95].mxu0  ;;  %v2042_v12 = vadd.f32 %v5446_v53, %v4489_v63  ;;  %v2779_v21 = vmax.f32 %v2039_v2, 0.0  ;;  %v2925_v63 = vmax.f32 %v2623_v54, 0.0  ;;  %v2626_v6 = vadd.f32 %v5446_v53, %v2625_v60 }
 0x1a2   : > { %v2777_v7 = vmax.f32 %v2031_v46, 0.0  ;;  %v3042_v8 = vadd.f32 %v3041_v62, %v2776_v59  ;;  %v2034_v9 = vadd.f32 %v5446_v53, %v2033_v5  ;;  %v3214_v20 = vadd.f32 %v3213_v42, %v2923_v31 }
 0x1a3   : > { %v2780_v29 = vmax.f32 %v2042_v12, 0.0  ;;  %v2631_v59 = vadd.f32 %v5446_v53, %v4636_v43  ;;  %v2634_v5 = vadd.f32 %v5446_v53, %v4637_v57  ;;  %v4951_v57 = vmov 0  }
 0x1a4   : > { %v3043_v15 = vadd.f32 %v3042_v8, %v2777_v7  ;;  %v2778_v16 = vmax.f32 %v2034_v9, 0.0  ;;  %v3215_v0 = vadd.f32 %v3214_v20, %v2924_v41  ;;  %v4861_v41 = vld [vmem:[%s5806_s3 + $0xac] ss:$12 sps:$4 sm:$0xff]   ;;  %3477 = vmatprep.mubr.bf16.mxu1 %v4951_v57 }
 0x1a5   : > { %v2927_v14 = vmax.f32 %v2631_v59, 0.0  ;;  %v2928_v23 = vmax.f32 %v2634_v5, 0.0  ;;  %3459 = vmatprep.subr.bf16.mxu1 %v4861_v41 }
 0x1a6   : > { %v3044_v24 = vadd.f32 %v3043_v15, %v2778_v16  ;;  %v4492_v25 = vpop.f32.mrb[96].mxu0  ;;  %v3216_v11 = vadd.f32 %v3215_v0, %v2925_v63  ;;  %v2926_v15 = vmax.f32 %v2626_v6, 0.0  ;;  %v4952_v0 = vmov 0.0  }
 0x1a7   : > { %v2046_v30 = vpop.f32.mrb[97].mxu0  ;;  %v2055_v37 = vadd.f32 %v5446_v53, %v4492_v25 }
 0x1a8   : > { %v3045_v32 = vadd.f32 %v3044_v24, %v2779_v21  ;;  %v2047_v33 = vadd.f32 %v5446_v53, %v2046_v30  ;;  %v4493_v34 = vpop.f32.mrb[98].mxu0  ;;  %v4640_v21 = vpop.f32.mrb[88].mxu1  ;;  %v3217_v24 = vadd.f32 %v3216_v11, %v2926_v15 }
 0x1a9   : > { %v2049_v38 = vpop.f32.mrb[99].mxu0  ;;  %v2058_v45 = vadd.f32 %v5446_v53, %v4493_v34  ;;  %v2783_v58 = vmax.f32 %v2055_v37, 0.0  ;;  %v2638_v25 = vpop.f32.mrb[89].mxu1 }
 0x1aa   : > { %v3046_v39 = vadd.f32 %v3045_v32, %v2780_v29  ;;  %v2050_v40 = vadd.f32 %v5446_v53, %v2049_v38  ;;  %v2781_v44 = vmax.f32 %v2047_v33, 0.0  ;;  %v2639_v29 = vadd.f32 %v5446_v53, %v2638_v25  ;;  %v4641_v30 = vpop.f32.mrb[90].mxu1 }
 0x1ab   : > { %v2784_v1 = vmax.f32 %v2058_v45, 0.0  ;;  %v3218_v32 = vadd.f32 %v3217_v24, %v2927_v14  ;;  %v2647_v33 = vadd.f32 %v5446_v53, %v4640_v21  ;;  %v2641_v34 = vpop.f32.mrb[91].mxu1  ;;  %v2650_v45 = vadd.f32 %v5446_v53, %v4641_v30 }
 0x1ac   : > { %v3047_v49 = vrot.slane %v3046_v39, 4  ;;  %v2782_v52 = vmax.f32 %v2050_v40, 0.0  ;;  %v2929_v38 = vmax.f32 %v2639_v29, 0.0  ;;  %v4859_v40 = vld [vmem:[%s5806_s3 + $0xa8] ss:$12 sps:$4 sm:$0xff]   ;;  %v4644_v63 = vpop.f32.mrb[92].mxu1 }
 0x1ad   : > { %v2931_v59 = vmax.f32 %v2647_v33, 0.0  ;;  %3460 = vmatpush1.bf16.msra.mxu1 %v4859_v40  ;;  %v2654_v5 = vpop.f32.mrb[93].mxu1 }
 0x1ae   : > { %v3048_v61 = vadd.f32 %v3047_v49, %v3046_v39  ;;  %v3053_v62 = vadd.f32 %v2782_v52, %v2781_v44  ;;  %v4496_v46 = vpop.f32.mrb[100].mxu0  ;;  %v2642_v39 = vadd.f32 %v5446_v53, %v2641_v34  ;;  %v3219_v44 = vadd.f32 %v3218_v32, %v2928_v23  ;;  %4650 = vmatprep.subr.bf16.mxu1 %v4952_v0 }
 0x1af   : > { %v2062_v2 = vpop.f32.mrb[101].mxu0  ;;  %v2071_v12 = vadd.f32 %v5446_v53, %v4496_v46 }
 0x1b0   : > { %v3049_v7 = vrot.slane %v3048_v61, 2  ;;  %v3054_v8 = vadd.f32 %v3053_v62, %v2783_v58  ;;  %v2063_v9 = vadd.f32 %v5446_v53, %v2062_v2  ;;  %v4497_v10 = vpop.f32.mrb[102].mxu0  ;;  %v2930_v54 = vmax.f32 %v2642_v39, 0.0 }
 0x1b1   : > { %v2065_v13 = vpop.f32.mrb[103].mxu0  ;;  %v2074_v22 = vadd.f32 %v5446_v53, %v4497_v10  ;;  %v2787_v31 = vmax.f32 %v2071_v12, 0.0  ;;  %v3220_v60 = vadd.f32 %v3219_v44, %v2929_v38  ;;  %v4645_v10 = vpop.f32.mrb[94].mxu1  ;;  %v2663_v12 = vadd.f32 %v5446_v53, %v4644_v63 }
 0x1b2   : > { %v3050_v16 = vadd.f32 %v3049_v7, %v3048_v61  ;;  %v2785_v17 = vmax.f32 %v2063_v9, 0.0  ;;  %v3055_v18 = vadd.f32 %v3054_v8, %v2784_v1  ;;  %v2066_v19 = vadd.f32 %v5446_v53, %v2065_v13  ;;  %v2657_v13 = vpop.f32.mrb[95].mxu1 }
 0x1b3   : > { %v2788_v42 = vmax.f32 %v2074_v22, 0.0  ;;  %v2932_v1 = vmax.f32 %v2650_v45, 0.0  ;;  %v3221_v2 = vadd.f32 %v3220_v60, %v2930_v54  ;;  %v2655_v9 = vadd.f32 %v5446_v53, %v2654_v5 }
 0x1b4   : > { %v3051_v26 = vrot.slane %v3050_v16, 1  ;;  %v3056_v27 = vadd.f32 %v3055_v18, %v2785_v17  ;;  %v2786_v28 = vmax.f32 %v2066_v19, 0.0  ;;  %v2658_v18 = vadd.f32 %v5446_v53, %v2657_v13 }
 0x1b5   : > { %v3222_v11 = vadd.f32 %v3221_v2, %v2931_v59  ;;  %v2933_v17 = vmax.f32 %v2655_v9, 0.0  ;;  %v2666_v22 = vadd.f32 %v5446_v53, %v4645_v10  ;;  %v2935_v29 = vmax.f32 %v2663_v12, 0.0 }
 0x1b6   : > { %v3052_v35 = vadd.f32 %v3051_v26, %v3050_v16  ;;  %v3057_v36 = vadd.f32 %v3056_v27, %v2786_v28  ;;  %v4500_v37 = vpop.f32.mrb[104].mxu0  ;;  %v2934_v27 = vmax.f32 %v2658_v18, 0.0 }
 0x1b7   : > { %v2078_v43 = vpop.f32.mrb[105].mxu0  ;;  %v2087_v61 = vadd.f32 %v5446_v53, %v4500_v37  ;;  %v3223_v21 = vadd.f32 %v3222_v11, %v2932_v1 }
 0x1b8   : > { %v5553_v48 = vsel %vm3248_vm4, %v3052_v35, %v5465_v3  ;;  %v3058_v49 = vadd.f32 %v3057_v36, %v2787_v31  ;;  %v2079_v52 = vadd.f32 %v5446_v53, %v2078_v43  ;;  %v4501_v20 = vpop.f32.mrb[106].mxu0  ;;  %v4648_v35 = vpop.f32.mrb[96].mxu1  ;;  %v2936_v36 = vmax.f32 %v2666_v22, 0.0 }
 0x1b9   : > { %v2081_v58 = vpop.f32.mrb[107].mxu0  ;;  %v2090_v7 = vadd.f32 %v5446_v53, %v4501_v20  ;;  %v2791_v14 = vmax.f32 %v2087_v61, 0.0  ;;  %v3224_v30 = vadd.f32 %v3223_v21, %v2933_v17  ;;  %v2670_v38 = vpop.f32.mrb[97].mxu1  ;;  %v2679_v45 = vadd.f32 %v5446_v53, %v4648_v35 }
 0x1ba   : > { %v2789_v62 = vmax.f32 %v2079_v52, 0.0  ;;  %v3059_v46 = vadd.f32 %v3058_v49, %v2788_v42  ;;  %v2082_v3 = vadd.f32 %v5446_v53, %v2081_v58  ;;  %v2671_v42 = vadd.f32 %v5446_v53, %v2670_v38  ;;  %v4649_v43 = vpop.f32.mrb[98].mxu1 }
 0x1bb   : > { %v2792_v23 = vmax.f32 %v2090_v7, 0.0  ;;  %v3225_v37 = vadd.f32 %v3224_v30, %v2934_v27  ;;  %v2673_v49 = vpop.f32.mrb[99].mxu1 }
 0x1bc   : > { %v3060_v6 = vadd.f32 %v3059_v46, %v2789_v62  ;;  %v2790_v8 = vmax.f32 %v2082_v3, 0.0  ;;  %v2937_v58 = vmax.f32 %v2671_v42, 0.0  ;;  %v2674_v59 = vadd.f32 %v5446_v53, %v2673_v49 }
 0x1bd   : > { %v3226_v44 = vadd.f32 %v3225_v37, %v2935_v29  ;;  %v2682_v62 = vadd.f32 %v5446_v53, %v4649_v43 }
 0x1be   : > { %v3061_v15 = vadd.f32 %v3060_v6, %v2790_v8  ;;  %v4504_v16 = vpop.f32.mrb[108].mxu0  ;;  %v2938_v2 = vmax.f32 %v2674_v59, 0.0  ;;  %v2939_v6 = vmax.f32 %v2679_v45, 0.0 }
 0x1bf   : > { %v2094_v19 = vpop.f32.mrb[109].mxu0  ;;  %v2103_v31 = vadd.f32 %v5446_v53, %v4504_v16  ;;  %v3227_v61 = vadd.f32 %v3226_v44, %v2936_v36  ;;  %v2940_v12 = vmax.f32 %v2682_v62, 0.0 }
 0x1c0   : > { %v3062_v24 = vadd.f32 %v3061_v15, %v2791_v14  ;;  %v2095_v25 = vadd.f32 %v5446_v53, %v2094_v19  ;;  %v4505_v26 = vpop.f32.mrb[110].mxu0 }
 0x1c1   : > { %v2097_v28 = vpop.f32.mrb[111].mxu0  ;;  %v2106_v40 = vadd.f32 %v5446_v53, %v4505_v26  ;;  %v2795_v52 = vmax.f32 %v2103_v31, 0.0  ;;  %v3228_v7 = vadd.f32 %v3227_v61, %v2937_v58 }
 0x1c2   : > { %v2793_v32 = vmax.f32 %v2095_v25, 0.0  ;;  %v3063_v33 = vadd.f32 %v3062_v24, %v2792_v23  ;;  %v2098_v34 = vadd.f32 %v5446_v53, %v2097_v28 }
 0x1c3   : > { %v2796_v46 = vmax.f32 %v2106_v40, 0.0  ;;  %v3229_v13 = vadd.f32 %v3228_v7, %v2938_v2 }
 0x1c4   : > { %v3064_v39 = vadd.f32 %v3063_v33, %v2793_v32  ;;  %v2794_v41 = vmax.f32 %v2098_v34, 0.0 }
 0x1c5   : > { %v3230_v17 = vadd.f32 %v3229_v13, %v2939_v6 }
 0x1c6   : > { %v3065_v20 = vadd.f32 %v3064_v39, %v2794_v41  ;;  %v4508_v54 = vpop.f32.mrb[112].mxu0 }
 0x1c7   : > { %v2110_v60 = vpop.f32.mrb[113].mxu0  ;;  %v2119_v8 = vadd.f32 %v5446_v53, %v4508_v54  ;;  %v5577_v23 = vadd.f32 %v3230_v17, %v2940_v12 }
 0x1c8   : > { %v3066_v3 = vadd.f32 %v3065_v20, %v2795_v52  ;;  %v2111_v63 = vadd.f32 %v5446_v53, %v2110_v60  ;;  %v4509_v1 = vpop.f32.mrb[114].mxu0 }
 0x1c9   : > { %v2113_v5 = vpop.f32.mrb[115].mxu0  ;;  %v2122_v15 = vadd.f32 %v5446_v53, %v4509_v1  ;;  %v2799_v18 = vmax.f32 %v2119_v8, 0.0 }
 0x1ca   : > { %v2797_v9 = vmax.f32 %v2111_v63, 0.0  ;;  %v3067_v10 = vadd.f32 %v3066_v3, %v2796_v46  ;;  %v2114_v11 = vadd.f32 %v5446_v53, %v2113_v5 }
 0x1cb   : > { %v2800_v24 = vmax.f32 %v2122_v15, 0.0 }
 0x1cc   : > { %v3068_v14 = vadd.f32 %v3067_v10, %v2797_v9  ;;  %v2798_v16 = vmax.f32 %v2114_v11, 0.0 }
 0x1ce   : > { %v3069_v19 = vadd.f32 %v3068_v14, %v2798_v16  ;;  %v4512_v21 = vpop.f32.mrb[116].mxu0 }
 0x1cf   : > { %v2126_v22 = vpop.f32.mrb[117].mxu0  ;;  %v2135_v29 = vadd.f32 %v5446_v53, %v4512_v21 }
 0x1d0   : > { %v3070_v25 = vadd.f32 %v3069_v19, %v2799_v18  ;;  %v2127_v26 = vadd.f32 %v5446_v53, %v2126_v22  ;;  %v4513_v27 = vpop.f32.mrb[118].mxu0 }
 0x1d1   : > { %v2129_v28 = vpop.f32.mrb[119].mxu0  ;;  %v2138_v34 = vadd.f32 %v5446_v53, %v4513_v27  ;;  %v2803_v36 = vmax.f32 %v2135_v29, 0.0 }
 0x1d2   : > { %v2801_v30 = vmax.f32 %v2127_v26, 0.0  ;;  %v3071_v31 = vadd.f32 %v3070_v25, %v2800_v24  ;;  %v2130_v32 = vadd.f32 %v5446_v53, %v2129_v28 }
 0x1d3   : > { %v2804_v40 = vmax.f32 %v2138_v34, 0.0 }
 0x1d4   : > { %v3072_v33 = vadd.f32 %v3071_v31, %v2801_v30  ;;  %v2802_v35 = vmax.f32 %v2130_v32, 0.0 }
 0x1d6   : > { %v3073_v37 = vadd.f32 %v3072_v33, %v2802_v35  ;;  %v4516_v38 = vpop.f32.mrb[120].mxu0 }
 0x1d7   : > { %v2142_v39 = vpop.f32.mrb[121].mxu0  ;;  %v2151_v45 = vadd.f32 %v5446_v53, %v4516_v38 }
 0x1d8   : > { %v3074_v41 = vadd.f32 %v3073_v37, %v2803_v36  ;;  %v2143_v42 = vadd.f32 %v5446_v53, %v2142_v39  ;;  %v4517_v43 = vpop.f32.mrb[122].mxu0 }
 0x1d9   : > { %v2145_v44 = vpop.f32.mrb[123].mxu0  ;;  %v2154_v58 = vadd.f32 %v5446_v53, %v4517_v43  ;;  %v2807_v60 = vmax.f32 %v2151_v45, 0.0 }
 0x1da   : > { %v2805_v49 = vmax.f32 %v2143_v42, 0.0  ;;  %v3075_v52 = vadd.f32 %v3074_v41, %v2804_v40  ;;  %v2146_v20 = vadd.f32 %v5446_v53, %v2145_v44 }
 0x1db   : > { %v2808_v3 = vmax.f32 %v2154_v58, 0.0 }
 0x1dc   : > { %v3076_v54 = vadd.f32 %v3075_v52, %v2805_v49  ;;  %v2806_v59 = vmax.f32 %v2146_v20, 0.0  ;;  %v5600_v49 = vld [vmem:[%s5805_s2] ss:$0 sm:$0xff] }
 0x1de   : > { %v3077_v61 = vadd.f32 %v3076_v54, %v2806_v59  ;;  %v4520_v62 = vpop.f32.mrb[124].mxu0 }
 0x1df   : > { %v2158_v46 = vpop.f32.mrb[125].mxu0  ;;  %v2167_v6 = vadd.f32 %v5446_v53, %v4520_v62 }
 0x1e0   : > { %v3078_v63 = vadd.f32 %v3077_v61, %v2807_v60  ;;  %v2159_v1 = vadd.f32 %v5446_v53, %v2158_v46  ;;  %v4521_v2 = vpop.f32.mrb[126].mxu0 }
 0x1e1   : > { %v2161_v5 = vpop.f32.mrb[127].mxu0  ;;  %v2170_v11 = vadd.f32 %v5446_v53, %v4521_v2  ;;  %v2811_v13 = vmax.f32 %v2167_v6, 0.0 }
 0x1e2   : > { %v2809_v7 = vmax.f32 %v2159_v1, 0.0  ;;  %v3079_v8 = vadd.f32 %v3078_v63, %v2808_v3  ;;  %v2162_v9 = vadd.f32 %v5446_v53, %v2161_v5 }
 0x1e3   : > { %v2812_v17 = vmax.f32 %v2170_v11, 0.0 }
 0x1e4   : > { %v3080_v10 = vadd.f32 %v3079_v8, %v2809_v7  ;;  %v2810_v12 = vmax.f32 %v2162_v9, 0.0 }
 0x1e6   : > { %v3081_v14 = vadd.f32 %v3080_v10, %v2810_v12  ;;  %v4524_v15 = vpop.f32.mrb[128].mxu0 }
 0x1e7   : > { %v2174_v16 = vpop.f32.mrb[129].mxu0  ;;  %v2183_v25 = vadd.f32 %v5446_v53, %v4524_v15 }
 0x1e8   : > { %v3082_v18 = vadd.f32 %v3081_v14, %v2811_v13  ;;  %v2175_v19 = vadd.f32 %v5446_v53, %v2174_v16  ;;  %v4525_v21 = vpop.f32.mrb[130].mxu0 }
 0x1e9   : > { %v2177_v22 = vpop.f32.mrb[131].mxu0  ;;  %v2186_v29 = vadd.f32 %v5446_v53, %v4525_v21  ;;  %v2815_v32 = vmax.f32 %v2183_v25, 0.0 }
 0x1ea   : > { %v3083_v24 = vadd.f32 %v3082_v18, %v2812_v17  ;;  %v2178_v26 = vadd.f32 %v5446_v53, %v2177_v22  ;;  %v2813_v28 = vmax.f32 %v2175_v19, 0.0 }
 0x1eb   : > { %v2816_v37 = vmax.f32 %v2186_v29, 0.0 }
 0x1ec   : > { %v3084_v27 = vrot.slane %v3083_v24, 4  ;;  %v2814_v30 = vmax.f32 %v2178_v26, 0.0 }
 0x1ee   : > { %v3085_v31 = vadd.f32 %v3084_v27, %v3083_v24  ;;  %v3090_v33 = vadd.f32 %v2814_v30, %v2813_v28  ;;  %v4528_v34 = vpop.f32.mrb[132].mxu0 }
 0x1ef   : > { %v2190_v35 = vpop.f32.mrb[133].mxu0  ;;  %v2199_v41 = vadd.f32 %v5446_v53, %v4528_v34 }
 0x1f0   : > { %v3086_v36 = vrot.slane %v3085_v31, 2  ;;  %v3091_v38 = vadd.f32 %v3090_v33, %v2815_v32  ;;  %v2191_v39 = vadd.f32 %v5446_v53, %v2190_v35  ;;  %v4529_v40 = vpop.f32.mrb[134].mxu0 }
 0x1f1   : > { %v2193_v42 = vpop.f32.mrb[135].mxu0  ;;  %v2202_v58 = vadd.f32 %v5600_v49, %v4529_v40  ;;  %v2819_v61 = vmax.f32 %v2199_v41, 0.0 }
 0x1f2   : > { %v3087_v43 = vadd.f32 %v3086_v36, %v3085_v31  ;;  %v2817_v44 = vmax.f32 %v2191_v39, 0.0  ;;  %v3092_v45 = vadd.f32 %v3091_v38, %v2816_v37  ;;  %v2194_v52 = vadd.f32 %v5600_v49, %v2193_v42 }
 0x1f3   : > { %v2820_v63 = vmax.f32 %v2202_v58, 0.0 }
 0x1f4   : > { %v3088_v20 = vrot.slane %v3087_v43, 1  ;;  %v3093_v54 = vadd.f32 %v3092_v45, %v2817_v44  ;;  %v2818_v59 = vmax.f32 %v2194_v52, 0.0 }
 0x1f6   : > { %v3089_v60 = vadd.f32 %v3088_v20, %v3087_v43  ;;  %v3094_v53 = vadd.f32 %v3093_v54, %v2818_v59  ;;  %v4532_v62 = vpop.f32.mrb[136].mxu0 }
 0x1f7   : > { %v2206_v46 = vpop.f32.mrb[137].mxu0  ;;  %v2215_v7 = vadd.f32 %v5600_v49, %v4532_v62 }
 0x1f8   : > { %v5605_v3 = vsel %vm3250_vm5, %v3089_v60, %v5553_v48  ;;  %v3095_v1 = vadd.f32 %v3094_v53, %v2819_v61  ;;  %v2207_v2 = vadd.f32 %v5600_v49, %v2206_v46  ;;  %v4533_v5 = vpop.f32.mrb[138].mxu0 }
 0x1f9   : > { %v2209_v6 = vpop.f32.mrb[139].mxu0  ;;  %v2218_v12 = vadd.f32 %v5600_v49, %v4533_v5  ;;  %v2823_v14 = vmax.f32 %v2215_v7, 0.0 }
 0x1fa   : > { %v2821_v8 = vmax.f32 %v2207_v2, 0.0  ;;  %v3096_v9 = vadd.f32 %v3095_v1, %v2820_v63  ;;  %v2210_v10 = vadd.f32 %v5600_v49, %v2209_v6 }
 0x1fb   : > { %v2824_v17 = vmax.f32 %v2218_v12, 0.0 }
 0x1fc   : > { %v3097_v11 = vadd.f32 %v3096_v9, %v2821_v8  ;;  %v2822_v13 = vmax.f32 %v2210_v10, 0.0 }
 0x1fe   : > { %v3098_v15 = vadd.f32 %v3097_v11, %v2822_v13  ;;  %v4536_v48 = vpop.f32.mrb[140].mxu0 }
 0x1ff   : > { %v2222_v16 = vpop.f32.mrb[141].mxu0  ;;  %v2231_v24 = vadd.f32 %v5600_v49, %v4536_v48 }
 0x200   : > { %v3099_v18 = vadd.f32 %v3098_v15, %v2823_v14  ;;  %v2223_v19 = vadd.f32 %v5600_v49, %v2222_v16  ;;  %v4537_v21 = vpop.f32.mrb[142].mxu0 }
 0x201   : > { %v2225_v22 = vpop.f32.mrb[143].mxu0  ;;  %v2234_v29 = vadd.f32 %v5600_v49, %v4537_v21  ;;  %v2827_v31 = vmax.f32 %v2231_v24, 0.0 }
 0x202   : > { %v2825_v25 = vmax.f32 %v2223_v19, 0.0  ;;  %v3100_v26 = vadd.f32 %v3099_v18, %v2824_v17  ;;  %v2226_v27 = vadd.f32 %v5600_v49, %v2225_v22 }
 0x203   : > { %v2828_v35 = vmax.f32 %v2234_v29, 0.0  ;;  %v2290_v29 = vadd.f32 %v5600_v49, %v5285_v56 }
 0x204   : > { %v3101_v28 = vadd.f32 %v3100_v26, %v2825_v25  ;;  %v2826_v30 = vmax.f32 %v2226_v27, 0.0  ;;  %v2287_v26 = vadd.f32 %v5600_v49, %v5279_v51  ;;  %v3195_v51 = vrot.slane %v5497_v47, 4 }
 0x206   : > { %v3102_v32 = vadd.f32 %v3101_v28, %v2826_v30  ;;  %v4540_v33 = vpop.f32.mrb[144].mxu0 }
 0x207   : > { %v2238_v34 = vpop.f32.mrb[145].mxu0  ;;  %v2247_v40 = vadd.f32 %v5600_v49, %v4540_v33  ;;  %v2841_v33 = vmax.f32 %v2287_v26, 0.0  ;;  %v4882_v26 = vld [vmem:[%s5808_s5 + $0x40] ss:$8 sps:$4 sm:$0xff]  }
 0x208   : > { %v3103_v36 = vadd.f32 %v3102_v32, %v2827_v31  ;;  %v2239_v37 = vadd.f32 %v5600_v49, %v2238_v34  ;;  %v4541_v38 = vpop.f32.mrb[146].mxu0  ;;  %v2295_v32 = vadd.f32 %v5600_v49, %v5276_v50  ;;  %v3196_v50 = vadd.f32 %v3195_v51, %v5497_v47  ;;  %v4900_v51 = vld [vmem:[%s5808_s5 + $0xa0] ss:$8 sps:$4 sm:$0xff]  }
 0x209   : > { %v2241_v39 = vpop.f32.mrb[147].mxu0  ;;  %v2250_v45 = vadd.f32 %v5600_v49, %v4541_v38  ;;  %v2831_v20 = vmax.f32 %v2247_v40, 0.0 }
 0x20a   : > { %v2829_v41 = vmax.f32 %v2239_v37, 0.0  ;;  %v3104_v42 = vadd.f32 %v3103_v36, %v2828_v35  ;;  %v2242_v43 = vadd.f32 %v5600_v49, %v2241_v39  ;;  %v3158_v35 = vrot.slane %v5409_v4, 4 }
 0x20b   : > { %v2832_v60 = vmax.f32 %v2250_v45, 0.0  ;;  %v2298_v36 = vadd.f32 %v5600_v49, %v5283_v55  ;;  %v2842_v37 = vmax.f32 %v2290_v29, 0.0  ;;  %v3232_v39 = vrot.slane %v5577_v23, 4  ;;  %v4890_v29 = vld [vmem:[%s5808_s5 + $0x64] ss:$8 sps:$4 sm:$0xff]  }
 0x20c   : > { %v3105_v44 = vadd.f32 %v3104_v42, %v2829_v41  ;;  %v2830_v52 = vmax.f32 %v2242_v43, 0.0  ;;  %v2843_v40 = vmax.f32 %v2295_v32, 0.0  ;;  %v3159_v41 = vadd.f32 %v3158_v35, %v5409_v4  ;;  %v4891_v32 = vld [vmem:[%s5808_s5 + $0x70] ss:$8 sps:$4 sm:$0xff]   ;;  %v4899_v35 = vld [vmem:[%s5808_s5 + $0x94] ss:$8 sps:$4 sm:$0xff]  }
 0x20d   : > { %v2844_v42 = vmax.f32 %v2298_v36, 0.0  ;;  %v4897_v36 = vld [vmem:[%s5808_s5 + $0x90] ss:$8 sps:$4 sm:$0xff]  }
 0x20e   : > { %v3106_v54 = vadd.f32 %v3105_v44, %v2830_v52  ;;  %v4544_v58 = vpop.f32.mrb[148].mxu0  ;;  %v3233_v44 = vadd.f32 %v3232_v39, %v5577_v23  ;;  %v3160_v52 = vrot.slane %v3159_v41, 2  ;;  %v4903_v39 = vld [vmem:[%s5808_s5 + $0xb0] ss:$8 sps:$4 sm:$0xff]  }
 0x20f   : > { %v2254_v59 = vpop.f32.mrb[149].mxu0  ;;  %v2263_v63 = vadd.f32 %v5600_v49, %v4544_v58 }
 0x210   : > { %v3107_v61 = vadd.f32 %v3106_v54, %v2831_v20  ;;  %v2255_v53 = vadd.f32 %v5600_v49, %v2254_v59  ;;  %v4545_v62 = vpop.f32.mrb[150].mxu0  ;;  %v3197_v20 = vrot.slane %v3196_v50, 2  ;;  %v3161_v58 = vadd.f32 %v3160_v52, %v3159_v41  ;;  %v4911_v41 = vld [vmem:[%s5808_s5 + $0xd4] ss:$8 sps:$4 sm:$0xff]   ;;  %v4920_v52 = vld [vmem:[%s5808_s5 + $0x104] ss:$8 sps:$4 sm:$0xff]  }
 0x211   : > { %v2257_v46 = vpop.f32.mrb[151].mxu0  ;;  %v2266_v7 = vadd.f32 %v5600_v49, %v4545_v62  ;;  %v2835_v9 = vmax.f32 %v2263_v63, 0.0 }
 0x212   : > { %v2833_v1 = vmax.f32 %v2255_v53, 0.0  ;;  %v3108_v2 = vadd.f32 %v3107_v61, %v2832_v60  ;;  %v2258_v5 = vadd.f32 %v5600_v49, %v2257_v46  ;;  %v3198_v59 = vadd.f32 %v3197_v20, %v3196_v50  ;;  %v4914_v50 = vld [vmem:[%s5808_s5 + $0xe4] ss:$8 sps:$4 sm:$0xff]  }
 0x213   : > { %v2836_v13 = vmax.f32 %v2266_v7, 0.0  ;;  %v3162_v62 = vrot.slane %v3161_v58, 1  ;;  %v3302_v20 = vlaneseq }
 0x214   : > { %v3109_v6 = vadd.f32 %v3108_v2, %v2833_v1  ;;  %v2834_v8 = vmax.f32 %v2258_v5, 0.0  ;;  %v3199_v46 = vrot.slane %v3198_v59, 1 }
 0x215   : > { %v3163_v1 = vadd.f32 %v3162_v62, %v3161_v58 }
 0x216   : > { %v3110_v10 = vadd.f32 %v3109_v6, %v2834_v8  ;;  %v4548_v11 = vpop.f32.mrb[152].mxu0  ;;  %v3200_v23 = vadd.f32 %v3199_v46, %v3198_v59 }
 0x217   : > { %v2270_v12 = vpop.f32.mrb[153].mxu0  ;;  %v2279_v17 = vadd.f32 %v5600_v49, %v4548_v11  ;;  %v4863_v11 = vld [vmem:[%s5806_s3 + $0x20] ss:$12 sps:$4 sm:$0xff]  }
 0x218   : > { %v3111_v14 = vadd.f32 %v3110_v10, %v2835_v9  ;;  %v2271_v15 = vadd.f32 %v5600_v49, %v2270_v12  ;;  %v4549_v48 = vpop.f32.mrb[154].mxu0  ;;  %v4862_v9 = vld [vmem:[%s5806_s3 + $0x8] ss:$12 sps:$4 sm:$0xff]   ;;  %v4865_v12 = vld [vmem:[%s5806_s3 + $0x50] ss:$12 sps:$4 sm:$0xff]  }
 0x219   : > { %v2273_v16 = vpop.f32.mrb[155].mxu0  ;;  %v2282_v24 = vadd.f32 %v5600_v49, %v4549_v48  ;;  %v2839_v27 = vmax.f32 %v2279_v17, 0.0  ;;  %v4869_v48 = vld [vmem:[%s5806_s3 + $0xb0] ss:$12 sps:$4 sm:$0xff]   ;;  %v4870_v17 = vld [vmem:[%s5808_s5] ss:$8 sps:$4 sm:$0xff]  }
 0x21a   : > { %v2837_v18 = vmax.f32 %v2271_v15, 0.0  ;;  %v3112_v19 = vadd.f32 %v3111_v14, %v2836_v13  ;;  %v2274_v21 = vadd.f32 %v5600_v49, %v2273_v16  ;;  %v3234_v49 = vrot.slane %v3233_v44, 2  ;;  %v4866_v13 = vld [vmem:[%s5806_s3 + $0x68] ss:$12 sps:$4 sm:$0xff]   ;;  %v4867_v14 = vld [vmem:[%s5806_s3 + $0x80] ss:$12 sps:$4 sm:$0xff]  }
 0x21b   : > { %v2840_v30 = vmax.f32 %v2282_v24, 0.0  ;;  %v4868_v15 = vld [vmem:[%s5806_s3 + $0x98] ss:$12 sps:$4 sm:$0xff]  }
 0x21c   : > { %v3113_v22 = vadd.f32 %v3112_v19, %v2837_v18  ;;  %v2838_v25 = vmax.f32 %v2274_v21, 0.0  ;;  %v3235_v61 = vadd.f32 %v3234_v49, %v3233_v44  ;;  %v4872_v16 = vld [vmem:[%s5808_s5 + $0x4] ss:$8 sps:$4 sm:$0xff]   ;;  %v4875_v18 = vld [vmem:[%s5808_s5 + $0x14] ss:$8 sps:$4 sm:$0xff]  }
 0x21d   : > { %v4878_v19 = vld [vmem:[%s5808_s5 + $0x24] ss:$8 sps:$4 sm:$0xff]   ;;  %v4876_v21 = vld [vmem:[%s5808_s5 + $0x20] ss:$8 sps:$4 sm:$0xff]   ;;  %v4879_v24 = vld [vmem:[%s5808_s5 + $0x30] ss:$8 sps:$4 sm:$0xff]  }
 0x21e   : > { %v3114_v28 = vadd.f32 %v3113_v22, %v2838_v25  ;;  %v3236_v63 = vrot.slane %v3235_v61, 1  ;;  %v4881_v22 = vld [vmem:[%s5808_s5 + $0x34] ss:$8 sps:$4 sm:$0xff]   ;;  %v4884_v25 = vld [vmem:[%s5808_s5 + $0x44] ss:$8 sps:$4 sm:$0xff]  }
 0x21f   : > { %v4917_v44 = vld [vmem:[%s5808_s5 + $0xf4] ss:$8 sps:$4 sm:$0xff]  }
 0x220   : > { %v3115_v31 = vadd.f32 %v3114_v28, %v2839_v27  ;;  %v3237_v5 = vadd.f32 %v3236_v63, %v3235_v61  ;;  %v4887_v27 = vld [vmem:[%s5808_s5 + $0x54] ss:$8 sps:$4 sm:$0xff]   ;;  %v4885_v28 = vld [vmem:[%s5808_s5 + $0x50] ss:$8 sps:$4 sm:$0xff]  }
 0x222   : > { %v3116_v34 = vadd.f32 %v3115_v31, %v2840_v30  ;;  %v4888_v30 = vld [vmem:[%s5808_s5 + $0x60] ss:$8 sps:$4 sm:$0xff]   ;;  %v4893_v31 = vld [vmem:[%s5808_s5 + $0x74] ss:$8 sps:$4 sm:$0xff]  }
 0x224   : > { %v3117_v38 = vadd.f32 %v3116_v34, %v2841_v33  ;;  %v4896_v33 = vld [vmem:[%s5808_s5 + $0x84] ss:$8 sps:$4 sm:$0xff]   ;;  %v4894_v34 = vld [vmem:[%s5808_s5 + $0x80] ss:$8 sps:$4 sm:$0xff]  }
 0x226   : > { %v3118_v56 = vadd.f32 %v3117_v38, %v2842_v37  ;;  %v4902_v37 = vld [vmem:[%s5808_s5 + $0xa4] ss:$8 sps:$4 sm:$0xff]   ;;  %v4905_v38 = vld [vmem:[%s5808_s5 + $0xb4] ss:$8 sps:$4 sm:$0xff]  }
 0x228   : > { %v3119_v43 = vadd.f32 %v3118_v56, %v2843_v40  ;;  %v4908_v40 = vld [vmem:[%s5808_s5 + $0xc4] ss:$8 sps:$4 sm:$0xff]   ;;  %v4906_v56 = vld [vmem:[%s5808_s5 + $0xc0] ss:$8 sps:$4 sm:$0xff]  }
 0x22a   : > { %v3120_v45 = vadd.f32 %v3119_v43, %v2844_v42  ;;  %v4909_v42 = vld [vmem:[%s5808_s5 + $0xd0] ss:$8 sps:$4 sm:$0xff]   ;;  %v4912_v43 = vld [vmem:[%s5808_s5 + $0xe0] ss:$8 sps:$4 sm:$0xff]  }
 0x22c   : > { %v3121_v55 = vrot.slane %v3120_v45, 4 }
 0x22e   : > { %v3122_v54 = vadd.f32 %v3121_v55, %v3120_v45  ;;  %v4915_v45 = vld [vmem:[%s5808_s5 + $0xf0] ss:$8 sps:$4 sm:$0xff]   ;;  %v3303_v55 = vshrl.u32 %v3302_v20, 7 }
 0x230   : > { %v3123_v60 = vrot.slane %v3122_v54, 2  ;;  %v3304_v49 = vsub.s32 0, %v3303_v55  ;;  %v3308_v58 = vsub.s32 1, %v3303_v55 }
 0x232   : > { %v3124_v53 = vadd.f32 %v3123_v60, %v3122_v54  ;;  %v3300_v54 = vld [vmem:[%s5807_s4] sm:$0x7] }
 0x233   : > { %v3305_v59 = vrot.slane %v3300_v54, %v3304_v49  ;;  %v3309_v60 = vrot.slane %v3300_v54, %v3308_v58 }
 0x234   : > { %v3125_v4 = vrot.slane %v3124_v53, 1 }
 0x236   : > { %v3126_v47 = vadd.f32 %v3125_v4, %v3124_v53 }
 0x238   : > { %v3253_v2 = vsel %vm3252_vm6, %v3126_v47, %v5605_v3  ;;  %v4864_v3 = vld [vmem:[%s5806_s3 + $0x38] ss:$12 sps:$4 sm:$0xff]  }
 0x239   : > { %v3255_v6 = vsel %vm3254_vm7, %v3163_v1, %v3253_v2  ;;  %v4918_v2 = vld [vmem:[%s5808_s5 + $0x100] ss:$8 sps:$4 sm:$0xff]  }
 0x23a   : > { %v3257_v7 = vsel %vm3256_vm8, %v3200_v23, %v3255_v6  ;;  %v4923_v6 = vld [vmem:[%s5808_s5 + $0x114] ss:$8 sps:$4 sm:$0xff]  }
 0x23b   : > { %v3259_v8 = vsel %vm3258_vm9, %v3237_v5, %v3257_v7  ;;  %v4921_v7 = vld [vmem:[%s5808_s5 + $0x110] ss:$8 sps:$4 sm:$0xff]  }
 0x23c   : > { %v3267_v10 = vpack.c.bf16 %v3259_v8, %v3259_v8  ;;  %v3312_v8 = vsub.s32 2, %v3303_v55 }
 0x23e   : > { %3478 = vmatmul.mubr.bf16.vlgmr.msra.gmra.mrb[100].mxu1 %v3267_v10 }
 0x23f   : > { %4651 = vmatpush3.bf16.msra.mxu1 %v4862_v9  ;;  %4666 = vmatprep.mubr.msk.bf16.mxu1 %vm4953_vm10, %v4952_v0  ;;  %v3313_v9 = vrot.slane %v3300_v54, %v3312_v8 }
 0x240   : > { %4652 = vmatprep.subr.bf16.mxu1 %v4952_v0 }
 0x243   : > { %4653 = vmatpush3.bf16.msra.mxu1 %v4863_v11 }
 0x244   : > { %4654 = vmatprep.subr.bf16.mxu1 %v4952_v0 }
 0x247   : > { %4655 = vmatpush3.bf16.msra.mxu1 %v4864_v3 }
 0x248   : > { %4656 = vmatprep.subr.bf16.mxu1 %v4952_v0 }
 0x24b   : > { %4657 = vmatpush3.bf16.msra.mxu1 %v4865_v12 }
 0x24c   : > { %4658 = vmatprep.subr.bf16.mxu1 %v4952_v0 }
 0x24f   : > { %4659 = vmatpush3.bf16.msra.mxu1 %v4866_v13 }
 0x250   : > { %4660 = vmatprep.subr.bf16.mxu1 %v4952_v0 }
 0x253   : > { %4661 = vmatpush3.bf16.msra.mxu1 %v4867_v14 }
 0x254   : > { %4662 = vmatprep.subr.bf16.mxu1 %v4952_v0 }
 0x257   : > { %4663 = vmatpush3.bf16.msra.mxu1 %v4868_v15 }
 0x258   : > { %4664 = vmatprep.subr.bf16.mxu1 %v4952_v0  ;;  %v4873_v0 = vld [vmem:[%s5808_s5 + $0x10] ss:$8 sps:$4 sm:$0xff]  }
 0x25b   : > { %4665 = vmatpush3.bf16.msra.mxu1 %v4869_v48  ;;  %v3568_v48 = vld [vmem:[%s5809_s6] sm:$0x3] }
 0x25c   : > { %3764 = vmatprep.subr.bf16.mxu1 %v4872_v16  ;;  %v3577_v16 = vrot.slane %v3568_v48, %v3308_v58 }
 0x25e   : > { %4667 = vmatmul.mubr.bf16.vlgmr.msra.gmra.mrb[104].mxu1 %v3267_v10 }
 0x25f   : > { %3765 = vmatpush1.bf16.msra.mxu1 %v4870_v17 }
 0x260   : > { %3766 = vmatprep.subr.bf16.mxu1 %v4875_v18 }
 0x263   : > { %3767 = vmatpush1.bf16.msra.mxu1 %v4873_v0 }
 0x264   : > { %3768 = vmatprep.subr.bf16.mxu1 %v4878_v19 }
 0x267   : > { %3769 = vmatpush1.bf16.msra.mxu1 %v4876_v21 }
 0x268   : > { %3770 = vmatprep.subr.bf16.mxu1 %v4881_v22 }
 0x26b   : > { %3771 = vmatpush1.bf16.msra.mxu1 %v4879_v24 }
 0x26c   : > { %3772 = vmatprep.subr.bf16.mxu1 %v4884_v25 }
 0x26f   : > { %3773 = vmatpush1.bf16.msra.mxu1 %v4882_v26 }
 0x270   : > { %3774 = vmatprep.subr.bf16.mxu1 %v4887_v27 }
 0x273   : > { %3775 = vmatpush1.bf16.msra.mxu1 %v4885_v28 }
 0x274   : > { %3776 = vmatprep.subr.bf16.mxu1 %v4890_v29 }
 0x277   : > { %3777 = vmatpush1.bf16.msra.mxu1 %v4888_v30 }
 0x278   : > { %3778 = vmatprep.subr.bf16.mxu1 %v4893_v31 }
 0x27b   : > { %3779 = vmatpush1.bf16.msra.mxu1 %v4891_v32 }
 0x27c   : > { %3780 = vmatprep.subr.bf16.mxu1 %v4896_v33 }
 0x27f   : > { %3781 = vmatpush1.bf16.msra.mxu1 %v4894_v34 }
 0x280   : > { %3782 = vmatprep.subr.bf16.mxu1 %v4899_v35 }
 0x283   : > { %3783 = vmatpush1.bf16.msra.mxu1 %v4897_v36 }
 0x284   : > { %3784 = vmatprep.subr.bf16.mxu1 %v4902_v37 }
 0x287   : > { %3785 = vmatpush1.bf16.msra.mxu1 %v4900_v51 }
 0x288   : > { %3786 = vmatprep.subr.bf16.mxu1 %v4905_v38 }
 0x28b   : > { %3787 = vmatpush1.bf16.msra.mxu1 %v4903_v39 }
 0x28c   : > { %3788 = vmatprep.subr.bf16.mxu1 %v4908_v40 }
 0x28f   : > { %3789 = vmatpush1.bf16.msra.mxu1 %v4906_v56 }
 0x290   : > { %3790 = vmatprep.subr.bf16.mxu1 %v4911_v41 }
 0x293   : > { %3791 = vmatpush1.bf16.msra.mxu1 %v4909_v42 }
 0x294   : > { %3792 = vmatprep.subr.bf16.mxu1 %v4914_v50 }
 0x297   : > { %3793 = vmatpush1.bf16.msra.mxu1 %v4912_v43 }
 0x298   : > { %3794 = vmatprep.subr.bf16.mxu1 %v4917_v44 }
 0x29b   : > { %3795 = vmatpush1.bf16.msra.mxu1 %v4915_v45 }
 0x29c   : > { %3805 = vmatprep.subr.bf16.mxu1 %v4920_v52 }
 0x311   : > { %v3479_v61 = vpop.f32.mrb[100].mxu1 }
 0x312   : > { %v3480_v53 = vadd.f32 %v3479_v61, %v3305_v59  ;;  %v3481_v62 = vpop.f32.mrb[101].mxu1 }
 0x313   : > { %v3482_v46 = vadd.f32 %v3481_v62, %v3309_v60  ;;  %v3483_v4 = vpop.f32.mrb[102].mxu1 }
 0x314   : > { %v3526_v63 = vmax.f32 %v3480_v53, 0.0  ;;  %v3484_v47 = vpop.f32.mrb[103].mxu1 }
 0x315   : > { %v3527_v1 = vmax.f32 %v3482_v46, 0.0 }
 0x316   : > { %v3529_v5 = vpack.c.bf16 %v3526_v63, %v3526_v63 }
 0x317   : > { %v3530_v23 = vpack.c.bf16 %v3527_v1, %v3527_v1 }
 0x319   : > { %3796 = vmatprep.mubr.bf16.mxu1 %v3530_v23 }
 0x31a   : > { %3797 = vmatmul.mubr.bf16.vlgmr.msra.gmra.mrb[108].mxu1 %v3529_v5 }
 0x31b   : > { %3806 = vmatpush1.bf16.msra.mxu1 %v4918_v2  ;;  %3837 = vmatprep.mubr.bf16.mxu1 %v4951_v57  ;;  %v3573_v57 = vrot.slane %v3568_v48, %v3304_v49 }
 0x31c   : > { %3807 = vmatprep.subr.bf16.mxu1 %v4923_v6 }
 0x31f   : > { %3808 = vmatpush1.bf16.msra.mxu1 %v4921_v7 }
 0x331   : > { %v3520_v10 = vpop.f32.mrb[104].mxu1 }
 0x332   : > { %v3521_v11 = vadd.f32 %v3520_v10, %v3313_v9  ;;  %v4668_v3 = vpop.f32.mrb[105].mxu1 }
 0x333   : > { %v3523_v12 = vpop.f32.mrb[106].mxu1 }
 0x334   : > { %v3528_v13 = vmax.f32 %v3521_v11, 0.0  ;;  %v4669_v14 = vpop.f32.mrb[107].mxu1 }
 0x336   : > { %v3531_v15 = vpack.c.bf16 %v3528_v13, %v3528_v13 }
 0x338   : > { %4246 = vmatmul.mubr.msk.bf16.vlgmr.msra.gmra.mrb[108].mxu1 %vm3760_vm11, %v3531_v15 }
 0x40b   : > { %v3839_v17 = vpop.f32.mrb[108].mxu1 }
 0x40c   : > { %v4674_v18 = vadd.f32 %v3839_v17, %v3573_v57  ;;  %v3841_v0 = vpop.f32.mrb[109].mxu1 }
 0x40d   : > { %v4675_v19 = vadd.f32 %v3841_v0, %v3577_v16  ;;  %v3843_v21 = vpop.f32.mrb[110].mxu1 }
 0x40e   : > { %3846 = vst [vmem:[%s311_s14] sm:$0xff] %v4674_v18  ;;  %v3844_v22 = vpop.f32.mrb[111].mxu1 }
 0x40f   : > { %3847 = vst [vmem:[%s311_s14 + $0x8] sm:$0xff] %v4675_v19 }
 0x410 PF: > { %s17_s26 = sadd.s32 1, %s4948_s26   ;;  %s5811_s24 = smov %s4944_s25 }
 0x411   : > { %p14_p6 = scmp.ge.s32.totalorder %s17_s26, 4   ;;  %s5812_s25 = smov %s5814_s27 }
 0x413   :  { %16 = sbr.rel (!%p14_p6) target bundleno = 2 (0x2), region = 86 }

</bundles_post_ra>
